<compile_context>
chip_gen: v7x
topology: tpu7x:2x2x1
jax: 0.10.0
libtpu: 0.0.40
codegen_flags: <defaults>
</compile_context>

<pallas_src>
import functools

import jax
import jax.numpy as jnp
from jax import lax
from jax.experimental import pallas as pl
from jax.experimental.pallas import tpu as pltpu


# ----------------------------------------------------------------------------------
# Fused Pallas kernel (per batch element, channel-major, everything VMEM-resident)
# ----------------------------------------------------------------------------------

def _texture_kernel(r_ref, w0_ref, w1_ref, w2_ref, w3_ref, wl_ref, c_ref, m_ref,
                    o_ref, col_ref, *, H, W, N):
    HW = H * W
    f32 = jnp.float32

    # Packed per-channel constants: cols 0..9 = folded BN scales, cols 10..19 = folded
    # BN shifts (conv bias of the producing conv already absorbed), col 20 = conv_last
    # bias folded with bn_last (full 4N rows).
    consts = c_ref[...]                                   # (4N, 32)

    def bn_relu(fm, row):
        s = consts[0:N, row:row + 1]                      # (N, 1), lane-broadcast
        t = consts[0:N, 10 + row:11 + row]
        return jnp.maximum(fm * s + t, 0.0)

    # 3x3 taps over the flat (row-major) lane axis: output pixel p reads pixel p + off.
    offs = tuple(dy * W + dx for dy in (-1, 0, 1) for dx in (-1, 0, 1))

    def fill_col(groups):
        # `groups` = [(fm, bn_row), ...]: the feature maps PyTorch would channel-concat.
        # Assembles the (9*Cin, HW) im2col block in col_ref, tap-major with torch
        # channel order inside each tap (matches the packed conv weights).  The
        # concatenated tensor / padded image is never materialized.
        cin = len(groups) * N
        for g, (fm, row) in enumerate(groups):
            a = bn_relu(fm, row)                          # (N, HW)
            for t, off in enumerate(offs):
                if off == 0:
                    piece = a
                else:
                    # pltpu.roll == jnp.roll semantics: out[p] = a[(p + off) % HW];
                    # the mask zeroes pixels whose source lies outside the image or
                    # would wrap across a row boundary (= zero padding).
                    piece = pltpu.roll(a, shift=(-off) % HW, axis=1) * m_ref[t:t + 1, :]
                col_ref[t * cin + g * N: t * cin + (g + 1) * N, :] = piece
        return cin

    r = r_ref[0]                                                      # (N, HW)
    fm0 = jnp.dot(w0_ref[...], r, preferred_element_type=f32)         # conv0 (1x1)

    cin = fill_col([(fm0, 0)])                                        # bn1 -> conv1
    fm1 = jnp.dot(w1_ref[...], col_ref[0:9 * cin, :], preferred_element_type=f32)

    cin = fill_col([(fm0, 1), (fm1, 2)])                              # bn2 -> conv2
    fm2 = jnp.dot(w2_ref[...], col_ref[0:9 * cin, :], preferred_element_type=f32)

    cin = fill_col([(fm0, 3), (fm1, 4), (fm2, 5)])                    # bn3 -> conv3
    fm3 = jnp.dot(w3_ref[...], col_ref[0:9 * cin, :], preferred_element_type=f32)

    # bn4 + ReLU, then conv_last (1x1, bn_last pre-folded) as ONE K=4N dot.
    for g, (fm, row) in enumerate(((fm0, 6), (fm1, 7), (fm2, 8), (fm3, 9))):
        col_ref[g * N:(g + 1) * N, :] = bn_relu(fm, row)
    out = jnp.dot(wl_ref[...], col_ref[0:4 * N, :], preferred_element_type=f32)
    o_ref[0] = out + consts[:, 20:21]                                 # lane-dense store


def _make_tap_masks(H, W):
    # (9, HW) f32 validity masks for the 9 conv taps (zero-padding semantics).
    pos = jnp.arange(H * W)
    y, x = pos // W, pos % W
    rows = []
    for dy in (-1, 0, 1):
        for dx in (-1, 0, 1):
            ok = (y + dy >= 0) & (y + dy < H) & (x + dx >= 0) & (x + dx < W)
            rows.append(ok)
    return jnp.stack(rows, axis=0).astype(jnp.float32)


def _fused_block(r_cmaj, masks, p, N, H, W):
    B = r_cmaj.shape[0]
    HW = H * W
    kern = functools.partial(_texture_kernel, H=H, W=W, N=N)
    inv = lambda i: (0, 0)
    return pl.pallas_call(
        kern,
        out_shape=jax.ShapeDtypeStruct((B, 4 * N, HW), jnp.float32),
        grid=(B,),
        in_specs=[
            pl.BlockSpec((1, N, HW), lambda i: (i, 0, 0)),   # residual, channel-major
            pl.BlockSpec((N, N), inv),                       # conv0 (Cout, Cin)
            pl.BlockSpec((N, 9 * N), inv),                   # conv1 im2col weights
            pl.BlockSpec((N, 18 * N), inv),                  # conv2 im2col weights
            pl.BlockSpec((N, 27 * N), inv),                  # conv3 im2col weights
            pl.BlockSpec((4 * N, 4 * N), inv),               # conv_last * bn_last
            pl.BlockSpec((4 * N, 32), inv),                  # packed per-channel consts
            pl.BlockSpec((9, HW), inv),                      # per-tap boundary masks
        ],
        out_specs=pl.BlockSpec((1, 4 * N, HW), lambda i: (i, 0, 0)),
        scratch_shapes=[pltpu.VMEM((27 * N, HW), jnp.float32)],      # im2col block
        compiler_params=pltpu.CompilerParams(
            dimension_semantics=("parallel",),               # one image per TC on v7x
        ),
    )(r_cmaj, p['w0'], p['w1'], p['w2'], p['w3'], p['wl'], p['consts'], masks)


# ----------------------------------------------------------------------------------
# Parameters (deterministic synthetic init, torch layouts) + folding to kernel layout
# ----------------------------------------------------------------------------------

def init_params(key, num_features):
    N = num_features
    ks = iter(jax.random.split(key, 40))

    def convp(cout, cin, k):
        w = 0.1 * jax.random.normal(next(ks), (cout, cin, k, k), jnp.float32)
        b = 0.05 * jax.random.normal(next(ks), (cout,), jnp.float32)
        return w, b

    def bnp(c):
        gamma = 1.0 + 0.1 * jax.random.normal(next(ks), (c,), jnp.float32)
        beta = 0.05 * jax.random.normal(next(ks), (c,), jnp.float32)
        mean = 0.1 * jax.random.normal(next(ks), (c,), jnp.float32)
        var = 1.0 + 0.1 * jax.random.uniform(next(ks), (c,), jnp.float32)
        return gamma, beta, mean, var

    return dict(
        conv0=convp(N, N, 1), conv1=convp(N, N, 3), conv2=convp(N, 2 * N, 3),
        conv3=convp(N, 3 * N, 3), conv_last=convp(4 * N, 4 * N, 1),
        bn1=bnp(N), bn2=bnp(2 * N), bn3=bnp(3 * N), bn4=bnp(4 * N),
        bn_last=bnp(4 * N))


def prep_params(raw, eps=1e-5):
    N = raw['conv0'][1].shape[0]

    def fold(name):
        gamma, beta, mean, var = raw[name]
        s = gamma / jnp.sqrt(var + eps)
        return s, beta - mean * s

    s1, t1 = fold('bn1')
    s2, t2 = fold('bn2')
    s3, t3 = fold('bn3')
    s4, t4 = fold('bn4')
    sl, tl = fold('bn_last')

    w0, b0 = raw['conv0']
    w1, b1 = raw['conv1']
    w2, b2 = raw['conv2']
    w3, b3 = raw['conv3']
    wl, bl = raw['conv_last']

    p = {}
    # 1x1 conv0: (Cout, Cin, 1, 1) -> (Cout, Cin); bias folded downstream.
    p['w0'] = w0[:, :, 0, 0]

    # 3x3 convs -> im2col weights (Cout, 9*Cin), tap-major, torch channel order per tap.
    def im2col_w(w):
        co, ci = w.shape[0], w.shape[1]
        return jnp.transpose(w, (0, 2, 3, 1)).reshape(co, 9 * ci)

    p['w1'] = im2col_w(w1)
    p['w2'] = im2col_w(w2)
    p['w3'] = im2col_w(w3)

    # conv_last + bn_last folded: y = sl*(Wl@a + bl) + tl = (sl*Wl)@a + (sl*bl + tl)
    p['wl'] = wl[:, :, 0, 0] * sl[:, None]

    # Packed per-channel constants (4N, 32):
    #   cols 0..9  : folded BN scales per (layer, group)
    #   cols 10..19: folded BN shifts with the producing conv's bias absorbed
    #   col  20    : conv_last bias folded with bn_last shift (all 4N rows)
    biases = (b0, b1, b2, b3)
    rows = []
    for s, t, ng in ((s1, t1, 1), (s2, t2, 2), (s3, t3, 3), (s4, t4, 4)):
        for g in range(ng):
            sg = s[g * N:(g + 1) * N]
            tg = t[g * N:(g + 1) * N] + sg * biases[g]
            rows.append((sg, tg))
    consts = jnp.zeros((4 * N, 32), jnp.float32)
    for j, (sg, tg) in enumerate(rows):
        consts = consts.at[0:N, j].set(sg)
        consts = consts.at[0:N, 10 + j].set(tg)
    consts = consts.at[:, 20].set(sl * bl + tl)
    p['consts'] = consts
    return p


# ----------------------------------------------------------------------------------
# Forward pass (mirrors Texture_Enhance_v1.forward)
# ----------------------------------------------------------------------------------

def texture_enhance_forward(params, feature_maps, attention_maps=(1, 1)):
    # feature_maps: NCHW (B, N, H, W), as in PyTorch.
    B, N, H, W = feature_maps.shape
    if isinstance(attention_maps, tuple):
        ah, aw = int(H * attention_maps[0]), int(W * attention_maps[1])
    else:
        ah, aw = attention_maps.shape[2], attention_maps.shape[3]
    assert H % ah == 0 and W % aw == 0, "only exact adaptive pooling supported"
    kh, kw = H // ah, W // aw

    # adaptive_avg_pool2d (exact windows) + nearest upsample + residual: tiny XLA glue.
    fm_d = feature_maps.reshape(B, N, ah, kh, aw, kw).mean(axis=(3, 5))   # (B,N,ah,aw)
    fm_up = jnp.repeat(jnp.repeat(fm_d, kh, axis=2), kw, axis=3)          # (B,N,H,W)
    residual = feature_maps - fm_up

    r_cmaj = residual.reshape(B, N, H * W)          # channel-major: pure reshape
    masks = _make_tap_masks(H, W)
    out_flat = _fused_block(r_cmaj, masks, params, N, H, W)   # (B, 4N, HW) lane-dense
    out = out_flat.reshape(B, 4 * N, H, W)                    # NCHW: pure reshape
    return out, fm_d


# ----------------------------------------------------------------------------------
# Pure-JAX reference (validation only)
# ----------------------------------------------------------------------------------

def ref_forward(raw, x, attention_maps=(1, 1)):
    B, N, H, W = x.shape
    ah, aw = int(H * attention_maps[0]), int(W * attention_maps[1])
    kh, kw = H // ah, W // aw
    fm_d = x.reshape(B, N, ah, kh, aw, kw).mean(axis=(3, 5))
    fm_up = jnp.repeat(jnp.repeat(fm_d, kh, axis=2), kw, axis=3)
    fm = x - fm_up

    def conv(inp, w, b, pad):
        y = lax.conv_general_dilated(inp, w, (1, 1), [(pad, pad), (pad, pad)],
                                     dimension_numbers=('NCHW', 'OIHW', 'NCHW'))
        return y + b[None, :, None, None]

    def bn(inp, gamma, beta, mean, var, relu=True):
        s = gamma / jnp.sqrt(var + 1e-5)
        y = (inp - mean[None, :, None, None]) * s[None, :, None, None] + beta[None, :, None, None]
        return jnp.maximum(y, 0.0) if relu else y

    fm0 = conv(fm, *raw['conv0'], 0)
    fm1 = conv(bn(fm0, *raw['bn1']), *raw['conv1'], 1)
    fm1_ = jnp.concatenate([fm0, fm1], axis=1)
    fm2 = conv(bn(fm1_, *raw['bn2']), *raw['conv2'], 1)
    fm2_ = jnp.concatenate([fm1_, fm2], axis=1)
    fm3 = conv(bn(fm2_, *raw['bn3']), *raw['conv3'], 1)
    fm3_ = jnp.concatenate([fm2_, fm3], axis=1)
    out = bn(conv(bn(fm3_, *raw['bn4']), *raw['conv_last'], 0), *raw['bn_last'], relu=False)
    return out, fm_d


# ----------------------------------------------------------------------------------
# Main
# ----------------------------------------------------------------------------------

if __name__ == "__main__":
    key = jax.random.PRNGKey(0)
    num_features = 4
    B, H, W = 2, 16, 16

    k_x, k_p = jax.random.split(key)
    x = jax.random.normal(k_x, (B, num_features, H, W), jnp.float32)
    raw = init_params(k_p, num_features)
    params = prep_params(raw)

    fwd = jax.jit(lambda inp: texture_enhance_forward(params, inp, attention_maps=(0.5, 0.5)))
    out, fm_d = fwd(x)
    jax.block_until_ready((out, fm_d))

    # also exercise the module's default attention_maps=(1, 1) path
    fwd_default = jax.jit(lambda inp: texture_enhance_forward(params, inp))
    out1, fm_d1 = fwd_default(x)
    jax.block_until_ready((out1, fm_d1))

    assert out.shape == (B, 4 * num_features, H, W)
    assert fm_d.shape == (B, num_features, 8, 8)

    # validate against a pure-JAX/XLA reference of the same math (tight f32 tolerance)
    def check(o, d, att):
        ro, rd = ref_forward(raw, x, att)
        rel = float(jnp.max(jnp.abs(o - ro)) / (jnp.max(jnp.abs(ro)) + 1e-6))
        derr = float(jnp.max(jnp.abs(d - rd)))
        assert rel < 1e-4, f"output mismatch (rel err {rel}) for attention {att}"
        assert derr < 1e-5, f"pooled-feature mismatch ({derr}) for attention {att}"

    check(out, fm_d, (0.5, 0.5))
    check(out1, fm_d1, (1, 1))

    print("KERNEL_OK")
</pallas_src>

<mosaic_0001>
module attributes {stable_mosaic.version = 11 : i64} {
  func.func @_texture_kernel(%arg0: i32, %arg1: memref<1x4x256xf32, #tpu.memory_space<vmem>>, %arg2: memref<4x4xf32, #tpu.memory_space<vmem>>, %arg3: memref<4x36xf32, #tpu.memory_space<vmem>>, %arg4: memref<4x72xf32, #tpu.memory_space<vmem>>, %arg5: memref<4x108xf32, #tpu.memory_space<vmem>>, %arg6: memref<16x16xf32, #tpu.memory_space<vmem>>, %arg7: memref<16x32xf32, #tpu.memory_space<vmem>>, %arg8: memref<9x256xf32, #tpu.memory_space<vmem>>, %arg9: memref<1x16x256xf32, #tpu.memory_space<vmem>>, %arg10: memref<108x256xf32, #tpu.memory_space<vmem>>) attributes {dimension_semantics = [#tpu.dimension_semantics<parallel>], iteration_bounds = array<i64: 2>, scalar_prefetch = 0 : i64, scratch_operands = 1 : i64, tpu.core_type = #tpu.core_type<tc>, window_params = [{transform_indices = @transform_0, window_bounds = array<i64: 1, 4, 256>}, {pipeline_mode = #tpu.pipeline_mode<synchronous>, transform_indices = @transform_1, window_bounds = array<i64: 4, 4>}, {pipeline_mode = #tpu.pipeline_mode<synchronous>, transform_indices = @transform_2, window_bounds = array<i64: 4, 36>}, {pipeline_mode = #tpu.pipeline_mode<synchronous>, transform_indices = @transform_3, window_bounds = array<i64: 4, 72>}, {pipeline_mode = #tpu.pipeline_mode<synchronous>, transform_indices = @transform_4, window_bounds = array<i64: 4, 108>}, {pipeline_mode = #tpu.pipeline_mode<synchronous>, transform_indices = @transform_5, window_bounds = array<i64: 16, 16>}, {pipeline_mode = #tpu.pipeline_mode<synchronous>, transform_indices = @transform_6, window_bounds = array<i64: 16, 32>}, {pipeline_mode = #tpu.pipeline_mode<synchronous>, transform_indices = @transform_7, window_bounds = array<i64: 9, 256>}, {transform_indices = @transform_8, window_bounds = array<i64: 1, 16, 256>}]} {
    %c0 = arith.constant 0 : index
    %c0_0 = arith.constant 0 : index
    %0 = vector.load %arg7[%c0, %c0_0] : memref<16x32xf32, #tpu.memory_space<vmem>>, vector<16x32xf32>
    %c0_1 = arith.constant 0 : index
    %c0_2 = arith.constant 0 : index
    %c0_3 = arith.constant 0 : index
    %1 = vector.load %arg1[%c0_1, %c0_2, %c0_3] : memref<1x4x256xf32, #tpu.memory_space<vmem>>, vector<1x4x256xf32>
    %2 = vector.shape_cast %1 : vector<1x4x256xf32> to vector<4x256xf32>
    %c0_4 = arith.constant 0 : index
    %c0_5 = arith.constant 0 : index
    %3 = vector.load %arg2[%c0_4, %c0_5] : memref<4x4xf32, #tpu.memory_space<vmem>>, vector<4x4xf32>
    %cst = arith.constant dense<0.000000e+00> : vector<4x256xf32>
    %4 = tpu.matmul %3, %2, %cst {dimension_numbers = #tpu.dot_dimension_numbers<[1], [0], [0], [1], [0, 0, 1, 1], [], []>} : vector<4x4xf32>, vector<4x256xf32>, vector<4x256xf32> -> vector<4x256xf32>
    %5 = vector.extract_strided_slice %0 {offsets = [0, 0], sizes = [4, 1], strides = [1, 1]} : vector<16x32xf32> to vector<4x1xf32>
    %6 = vector.extract_strided_slice %0 {offsets = [0, 10], sizes = [4, 1], strides = [1, 1]} : vector<16x32xf32> to vector<4x1xf32>
    %7 = vector.broadcast %5 : vector<4x1xf32> to vector<4x256xf32>
    %8 = arith.mulf %4, %7 : vector<4x256xf32>
    %9 = vector.broadcast %6 : vector<4x1xf32> to vector<4x256xf32>
    %10 = arith.addf %8, %9 : vector<4x256xf32>
    %cst_6 = arith.constant 0.000000e+00 : f32
    %11 = vector.broadcast %cst_6 : f32 to vector<4x256xf32>
    %12 = arith.maximumf %10, %11 : vector<4x256xf32>
    %c17_i32 = arith.constant 17 : i32
    %13 = tpu.dynamic_rotate %12 by %c17_i32 dim 1 : vector<4x256xf32>, i32 -> vector<4x256xf32>
    %c0_7 = arith.constant 0 : index
    %c0_8 = arith.constant 0 : index
    %14 = vector.load %arg8[%c0_7, %c0_8] : memref<9x256xf32, #tpu.memory_space<vmem>>, vector<1x256xf32>
    %15 = vector.broadcast %14 : vector<1x256xf32> to vector<4x256xf32>
    %16 = arith.mulf %13, %15 : vector<4x256xf32>
    %c0_9 = arith.constant 0 : index
    %c0_10 = arith.constant 0 : index
    %17 = vector.load %arg10[%c0_9, %c0_10] : memref<108x256xf32, #tpu.memory_space<vmem>>, vector<4x256xf32>
    tpu.vector_store %arg10[%c0_9, %c0_10], %16 {strides = array<i32>} : memref<108x256xf32, #tpu.memory_space<vmem>>, vector<4x256xf32>,
    %c16_i32 = arith.constant 16 : i32
    %18 = tpu.dynamic_rotate %12 by %c16_i32 dim 1 : vector<4x256xf32>, i32 -> vector<4x256xf32>
    %c1 = arith.constant 1 : index
    %c0_11 = arith.constant 0 : index
    %19 = vector.load %arg8[%c1, %c0_11] : memref<9x256xf32, #tpu.memory_space<vmem>>, vector<1x256xf32>
    %20 = vector.broadcast %19 : vector<1x256xf32> to vector<4x256xf32>
    %21 = arith.mulf %18, %20 : vector<4x256xf32>
    %c4 = arith.constant 4 : index
    %c0_12 = arith.constant 0 : index
    %22 = vector.load %arg10[%c4, %c0_12] : memref<108x256xf32, #tpu.memory_space<vmem>>, vector<4x256xf32>
    tpu.vector_store %arg10[%c4, %c0_12], %21 {strides = array<i32>} : memref<108x256xf32, #tpu.memory_space<vmem>>, vector<4x256xf32>,
    %c15_i32 = arith.constant 15 : i32
    %23 = tpu.dynamic_rotate %12 by %c15_i32 dim 1 : vector<4x256xf32>, i32 -> vector<4x256xf32>
    %c2 = arith.constant 2 : index
    %c0_13 = arith.constant 0 : index
    %24 = vector.load %arg8[%c2, %c0_13] : memref<9x256xf32, #tpu.memory_space<vmem>>, vector<1x256xf32>
    %25 = vector.broadcast %24 : vector<1x256xf32> to vector<4x256xf32>
    %26 = arith.mulf %23, %25 : vector<4x256xf32>
    %c8 = arith.constant 8 : index
    %c0_14 = arith.constant 0 : index
    %27 = vector.load %arg10[%c8, %c0_14] : memref<108x256xf32, #tpu.memory_space<vmem>>, vector<4x256xf32>
    tpu.vector_store %arg10[%c8, %c0_14], %26 {strides = array<i32>} : memref<108x256xf32, #tpu.memory_space<vmem>>, vector<4x256xf32>,
    %c1_i32 = arith.constant 1 : i32
    %28 = tpu.dynamic_rotate %12 by %c1_i32 dim 1 : vector<4x256xf32>, i32 -> vector<4x256xf32>
    %c3 = arith.constant 3 : index
    %c0_15 = arith.constant 0 : index
    %29 = vector.load %arg8[%c3, %c0_15] : memref<9x256xf32, #tpu.memory_space<vmem>>, vector<1x256xf32>
    %30 = vector.broadcast %29 : vector<1x256xf32> to vector<4x256xf32>
    %31 = arith.mulf %28, %30 : vector<4x256xf32>
    %c12 = arith.constant 12 : index
    %c0_16 = arith.constant 0 : index
    %32 = vector.load %arg10[%c12, %c0_16] : memref<108x256xf32, #tpu.memory_space<vmem>>, vector<4x256xf32>
    tpu.vector_store %arg10[%c12, %c0_16], %31 {strides = array<i32>} : memref<108x256xf32, #tpu.memory_space<vmem>>, vector<4x256xf32>,
    %c16 = arith.constant 16 : index
    %c0_17 = arith.constant 0 : index
    %33 = vector.load %arg10[%c16, %c0_17] : memref<108x256xf32, #tpu.memory_space<vmem>>, vector<4x256xf32>
    tpu.vector_store %arg10[%c16, %c0_17], %12 {strides = array<i32>} : memref<108x256xf32, #tpu.memory_space<vmem>>, vector<4x256xf32>,
    %c255_i32 = arith.constant 255 : i32
    %34 = tpu.dynamic_rotate %12 by %c255_i32 dim 1 : vector<4x256xf32>, i32 -> vector<4x256xf32>
    %c5 = arith.constant 5 : index
    %c0_18 = arith.constant 0 : index
    %35 = vector.load %arg8[%c5, %c0_18] : memref<9x256xf32, #tpu.memory_space<vmem>>, vector<1x256xf32>
    %36 = vector.broadcast %35 : vector<1x256xf32> to vector<4x256xf32>
    %37 = arith.mulf %34, %36 : vector<4x256xf32>
    %c20 = arith.constant 20 : index
    %c0_19 = arith.constant 0 : index
    %38 = vector.load %arg10[%c20, %c0_19] : memref<108x256xf32, #tpu.memory_space<vmem>>, vector<4x256xf32>
    tpu.vector_store %arg10[%c20, %c0_19], %37 {strides = array<i32>} : memref<108x256xf32, #tpu.memory_space<vmem>>, vector<4x256xf32>,
    %c241_i32 = arith.constant 241 : i32
    %39 = tpu.dynamic_rotate %12 by %c241_i32 dim 1 : vector<4x256xf32>, i32 -> vector<4x256xf32>
    %c6 = arith.constant 6 : index
    %c0_20 = arith.constant 0 : index
    %40 = vector.load %arg8[%c6, %c0_20] : memref<9x256xf32, #tpu.memory_space<vmem>>, vector<1x256xf32>
    %41 = vector.broadcast %40 : vector<1x256xf32> to vector<4x256xf32>
    %42 = arith.mulf %39, %41 : vector<4x256xf32>
    %c24 = arith.constant 24 : index
    %c0_21 = arith.constant 0 : index
    %43 = vector.load %arg10[%c24, %c0_21] : memref<108x256xf32, #tpu.memory_space<vmem>>, vector<4x256xf32>
    tpu.vector_store %arg10[%c24, %c0_21], %42 {strides = array<i32>} : memref<108x256xf32, #tpu.memory_space<vmem>>, vector<4x256xf32>,
    %c240_i32 = arith.constant 240 : i32
    %44 = tpu.dynamic_rotate %12 by %c240_i32 dim 1 : vector<4x256xf32>, i32 -> vector<4x256xf32>
    %c7 = arith.constant 7 : index
    %c0_22 = arith.constant 0 : index
    %45 = vector.load %arg8[%c7, %c0_22] : memref<9x256xf32, #tpu.memory_space<vmem>>, vector<1x256xf32>
    %46 = vector.broadcast %45 : vector<1x256xf32> to vector<4x256xf32>
    %47 = arith.mulf %44, %46 : vector<4x256xf32>
    %c28 = arith.constant 28 : index
    %c0_23 = arith.constant 0 : index
    %48 = vector.load %arg10[%c28, %c0_23] : memref<108x256xf32, #tpu.memory_space<vmem>>, vector<4x256xf32>
    tpu.vector_store %arg10[%c28, %c0_23], %47 {strides = array<i32>} : memref<108x256xf32, #tpu.memory_space<vmem>>, vector<4x256xf32>,
    %c239_i32 = arith.constant 239 : i32
    %49 = tpu.dynamic_rotate %12 by %c239_i32 dim 1 : vector<4x256xf32>, i32 -> vector<4x256xf32>
    %c8_24 = arith.constant 8 : index
    %c0_25 = arith.constant 0 : index
    %50 = vector.load %arg8[%c8_24, %c0_25] : memref<9x256xf32, #tpu.memory_space<vmem>>, vector<1x256xf32>
    %51 = vector.broadcast %50 : vector<1x256xf32> to vector<4x256xf32>
    %52 = arith.mulf %49, %51 : vector<4x256xf32>
    %c32 = arith.constant 32 : index
    %c0_26 = arith.constant 0 : index
    %53 = vector.load %arg10[%c32, %c0_26] : memref<108x256xf32, #tpu.memory_space<vmem>>, vector<4x256xf32>
    tpu.vector_store %arg10[%c32, %c0_26], %52 {strides = array<i32>} : memref<108x256xf32, #tpu.memory_space<vmem>>, vector<4x256xf32>,
    %c0_27 = arith.constant 0 : index
    %c0_28 = arith.constant 0 : index
    %54 = vector.load %arg3[%c0_27, %c0_28] : memref<4x36xf32, #tpu.memory_space<vmem>>, vector<4x36xf32>
    %c0_29 = arith.constant 0 : index
    %c0_30 = arith.constant 0 : index
    %55 = vector.load %arg10[%c0_29, %c0_30] : memref<108x256xf32, #tpu.memory_space<vmem>>, vector<36x256xf32>
    %cst_31 = arith.constant dense<0.000000e+00> : vector<4x256xf32>
    %56 = tpu.matmul %54, %55, %cst_31 {dimension_numbers = #tpu.dot_dimension_numbers<[1], [0], [0], [1], [0, 0, 1, 1], [], []>} : vector<4x36xf32>, vector<36x256xf32>, vector<4x256xf32> -> vector<4x256xf32>
    %57 = vector.extract_strided_slice %0 {offsets = [0, 1], sizes = [4, 1], strides = [1, 1]} : vector<16x32xf32> to vector<4x1xf32>
    %58 = vector.extract_strided_slice %0 {offsets = [0, 11], sizes = [4, 1], strides = [1, 1]} : vector<16x32xf32> to vector<4x1xf32>
    %59 = vector.broadcast %57 : vector<4x1xf32> to vector<4x256xf32>
    %60 = arith.mulf %4, %59 : vector<4x256xf32>
    %61 = vector.broadcast %58 : vector<4x1xf32> to vector<4x256xf32>
    %62 = arith.addf %60, %61 : vector<4x256xf32>
    %cst_32 = arith.constant 0.000000e+00 : f32
    %63 = vector.broadcast %cst_32 : f32 to vector<4x256xf32>
    %64 = arith.maximumf %62, %63 : vector<4x256xf32>
    %c17_i32_33 = arith.constant 17 : i32
    %65 = tpu.dynamic_rotate %64 by %c17_i32_33 dim 1 : vector<4x256xf32>, i32 -> vector<4x256xf32>
    %c0_34 = arith.constant 0 : index
    %c0_35 = arith.constant 0 : index
    %66 = vector.load %arg8[%c0_34, %c0_35] : memref<9x256xf32, #tpu.memory_space<vmem>>, vector<1x256xf32>
    %67 = vector.broadcast %66 : vector<1x256xf32> to vector<4x256xf32>
    %68 = arith.mulf %65, %67 : vector<4x256xf32>
    %c0_36 = arith.constant 0 : index
    %c0_37 = arith.constant 0 : index
    %69 = vector.load %arg10[%c0_36, %c0_37] : memref<108x256xf32, #tpu.memory_space<vmem>>, vector<4x256xf32>
    tpu.vector_store %arg10[%c0_36, %c0_37], %68 {strides = array<i32>} : memref<108x256xf32, #tpu.memory_space<vmem>>, vector<4x256xf32>,
    %c16_i32_38 = arith.constant 16 : i32
    %70 = tpu.dynamic_rotate %64 by %c16_i32_38 dim 1 : vector<4x256xf32>, i32 -> vector<4x256xf32>
    %c1_39 = arith.constant 1 : index
    %c0_40 = arith.constant 0 : index
    %71 = vector.load %arg8[%c1_39, %c0_40] : memref<9x256xf32, #tpu.memory_space<vmem>>, vector<1x256xf32>
    %72 = vector.broadcast %71 : vector<1x256xf32> to vector<4x256xf32>
    %73 = arith.mulf %70, %72 : vector<4x256xf32>
    %c8_41 = arith.constant 8 : index
    %c0_42 = arith.constant 0 : index
    %74 = vector.load %arg10[%c8_41, %c0_42] : memref<108x256xf32, #tpu.memory_space<vmem>>, vector<4x256xf32>
    tpu.vector_store %arg10[%c8_41, %c0_42], %73 {strides = array<i32>} : memref<108x256xf32, #tpu.memory_space<vmem>>, vector<4x256xf32>,
    %c15_i32_43 = arith.constant 15 : i32
    %75 = tpu.dynamic_rotate %64 by %c15_i32_43 dim 1 : vector<4x256xf32>, i32 -> vector<4x256xf32>
    %c2_44 = arith.constant 2 : index
    %c0_45 = arith.constant 0 : index
    %76 = vector.load %arg8[%c2_44, %c0_45] : memref<9x256xf32, #tpu.memory_space<vmem>>, vector<1x256xf32>
    %77 = vector.broadcast %76 : vector<1x256xf32> to vector<4x256xf32>
    %78 = arith.mulf %75, %77 : vector<4x256xf32>
    %c16_46 = arith.constant 16 : index
    %c0_47 = arith.constant 0 : index
    %79 = vector.load %arg10[%c16_46, %c0_47] : memref<108x256xf32, #tpu.memory_space<vmem>>, vector<4x256xf32>
    tpu.vector_store %arg10[%c16_46, %c0_47], %78 {strides = array<i32>} : memref<108x256xf32, #tpu.memory_space<vmem>>, vector<4x256xf32>,
    %c1_i32_48 = arith.constant 1 : i32
    %80 = tpu.dynamic_rotate %64 by %c1_i32_48 dim 1 : vector<4x256xf32>, i32 -> vector<4x256xf32>
    %c3_49 = arith.constant 3 : index
    %c0_50 = arith.constant 0 : index
    %81 = vector.load %arg8[%c3_49, %c0_50] : memref<9x256xf32, #tpu.memory_space<vmem>>, vector<1x256xf32>
    %82 = vector.broadcast %81 : vector<1x256xf32> to vector<4x256xf32>
    %83 = arith.mulf %80, %82 : vector<4x256xf32>
    %c24_51 = arith.constant 24 : index
    %c0_52 = arith.constant 0 : index
    %84 = vector.load %arg10[%c24_51, %c0_52] : memref<108x256xf32, #tpu.memory_space<vmem>>, vector<4x256xf32>
    tpu.vector_store %arg10[%c24_51, %c0_52], %83 {strides = array<i32>} : memref<108x256xf32, #tpu.memory_space<vmem>>, vector<4x256xf32>,
    %c32_53 = arith.constant 32 : index
    %c0_54 = arith.constant 0 : index
    %85 = vector.load %arg10[%c32_53, %c0_54] : memref<108x256xf32, #tpu.memory_space<vmem>>, vector<4x256xf32>
    tpu.vector_store %arg10[%c32_53, %c0_54], %64 {strides = array<i32>} : memref<108x256xf32, #tpu.memory_space<vmem>>, vector<4x256xf32>,
    %c255_i32_55 = arith.constant 255 : i32
    %86 = tpu.dynamic_rotate %64 by %c255_i32_55 dim 1 : vector<4x256xf32>, i32 -> vector<4x256xf32>
    %c5_56 = arith.constant 5 : index
    %c0_57 = arith.constant 0 : index
    %87 = vector.load %arg8[%c5_56, %c0_57] : memref<9x256xf32, #tpu.memory_space<vmem>>, vector<1x256xf32>
    %88 = vector.broadcast %87 : vector<1x256xf32> to vector<4x256xf32>
    %89 = arith.mulf %86, %88 : vector<4x256xf32>
    %c40 = arith.constant 40 : index
    %c0_58 = arith.constant 0 : index
    %90 = vector.load %arg10[%c40, %c0_58] : memref<108x256xf32, #tpu.memory_space<vmem>>, vector<4x256xf32>
    tpu.vector_store %arg10[%c40, %c0_58], %89 {strides = array<i32>} : memref<108x256xf32, #tpu.memory_space<vmem>>, vector<4x256xf32>,
    %c241_i32_59 = arith.constant 241 : i32
    %91 = tpu.dynamic_rotate %64 by %c241_i32_59 dim 1 : vector<4x256xf32>, i32 -> vector<4x256xf32>
    %c6_60 = arith.constant 6 : index
    %c0_61 = arith.constant 0 : index
    %92 = vector.load %arg8[%c6_60, %c0_61] : memref<9x256xf32, #tpu.memory_space<vmem>>, vector<1x256xf32>
    %93 = vector.broadcast %92 : vector<1x256xf32> to vector<4x256xf32>
    %94 = arith.mulf %91, %93 : vector<4x256xf32>
    %c48 = arith.constant 48 : index
    %c0_62 = arith.constant 0 : index
    %95 = vector.load %arg10[%c48, %c0_62] : memref<108x256xf32, #tpu.memory_space<vmem>>, vector<4x256xf32>
    tpu.vector_store %arg10[%c48, %c0_62], %94 {strides = array<i32>} : memref<108x256xf32, #tpu.memory_space<vmem>>, vector<4x256xf32>,
    %c240_i32_63 = arith.constant 240 : i32
    %96 = tpu.dynamic_rotate %64 by %c240_i32_63 dim 1 : vector<4x256xf32>, i32 -> vector<4x256xf32>
    %c7_64 = arith.constant 7 : index
    %c0_65 = arith.constant 0 : index
    %97 = vector.load %arg8[%c7_64, %c0_65] : memref<9x256xf32, #tpu.memory_space<vmem>>, vector<1x256xf32>
    %98 = vector.broadcast %97 : vector<1x256xf32> to vector<4x256xf32>
    %99 = arith.mulf %96, %98 : vector<4x256xf32>
    %c56 = arith.constant 56 : index
    %c0_66 = arith.constant 0 : index
    %100 = vector.load %arg10[%c56, %c0_66] : memref<108x256xf32, #tpu.memory_space<vmem>>, vector<4x256xf32>
    tpu.vector_store %arg10[%c56, %c0_66], %99 {strides = array<i32>} : memref<108x256xf32, #tpu.memory_space<vmem>>, vector<4x256xf32>,
    %c239_i32_67 = arith.constant 239 : i32
    %101 = tpu.dynamic_rotate %64 by %c239_i32_67 dim 1 : vector<4x256xf32>, i32 -> vector<4x256xf32>
    %c8_68 = arith.constant 8 : index
    %c0_69 = arith.constant 0 : index
    %102 = vector.load %arg8[%c8_68, %c0_69] : memref<9x256xf32, #tpu.memory_space<vmem>>, vector<1x256xf32>
    %103 = vector.broadcast %102 : vector<1x256xf32> to vector<4x256xf32>
    %104 = arith.mulf %101, %103 : vector<4x256xf32>
    %c64 = arith.constant 64 : index
    %c0_70 = arith.constant 0 : index
    %105 = vector.load %arg10[%c64, %c0_70] : memref<108x256xf32, #tpu.memory_space<vmem>>, vector<4x256xf32>
    tpu.vector_store %arg10[%c64, %c0_70], %104 {strides = array<i32>} : memref<108x256xf32, #tpu.memory_space<vmem>>, vector<4x256xf32>,
    %106 = vector.extract_strided_slice %0 {offsets = [0, 2], sizes = [4, 1], strides = [1, 1]} : vector<16x32xf32> to vector<4x1xf32>
    %107 = vector.extract_strided_slice %0 {offsets = [0, 12], sizes = [4, 1], strides = [1, 1]} : vector<16x32xf32> to vector<4x1xf32>
    %108 = vector.broadcast %106 : vector<4x1xf32> to vector<4x256xf32>
    %109 = arith.mulf %56, %108 : vector<4x256xf32>
    %110 = vector.broadcast %107 : vector<4x1xf32> to vector<4x256xf32>
    %111 = arith.addf %109, %110 : vector<4x256xf32>
    %cst_71 = arith.constant 0.000000e+00 : f32
    %112 = vector.broadcast %cst_71 : f32 to vector<4x256xf32>
    %113 = arith.maximumf %111, %112 : vector<4x256xf32>
    %c17_i32_72 = arith.constant 17 : i32
    %114 = tpu.dynamic_rotate %113 by %c17_i32_72 dim 1 : vector<4x256xf32>, i32 -> vector<4x256xf32>
    %c0_73 = arith.constant 0 : index
    %c0_74 = arith.constant 0 : index
    %115 = vector.load %arg8[%c0_73, %c0_74] : memref<9x256xf32, #tpu.memory_space<vmem>>, vector<1x256xf32>
    %116 = vector.broadcast %115 : vector<1x256xf32> to vector<4x256xf32>
    %117 = arith.mulf %114, %116 : vector<4x256xf32>
    %c4_75 = arith.constant 4 : index
    %c0_76 = arith.constant 0 : index
    %118 = vector.load %arg10[%c4_75, %c0_76] : memref<108x256xf32, #tpu.memory_space<vmem>>, vector<4x256xf32>
    tpu.vector_store %arg10[%c4_75, %c0_76], %117 {strides = array<i32>} : memref<108x256xf32, #tpu.memory_space<vmem>>, vector<4x256xf32>,
    %c16_i32_77 = arith.constant 16 : i32
    %119 = tpu.dynamic_rotate %113 by %c16_i32_77 dim 1 : vector<4x256xf32>, i32 -> vector<4x256xf32>
    %c1_78 = arith.constant 1 : index
    %c0_79 = arith.constant 0 : index
    %120 = vector.load %arg8[%c1_78, %c0_79] : memref<9x256xf32, #tpu.memory_space<vmem>>, vector<1x256xf32>
    %121 = vector.broadcast %120 : vector<1x256xf32> to vector<4x256xf32>
    %122 = arith.mulf %119, %121 : vector<4x256xf32>
    %c12_80 = arith.constant 12 : index
    %c0_81 = arith.constant 0 : index
    %123 = vector.load %arg10[%c12_80, %c0_81] : memref<108x256xf32, #tpu.memory_space<vmem>>, vector<4x256xf32>
    tpu.vector_store %arg10[%c12_80, %c0_81], %122 {strides = array<i32>} : memref<108x256xf32, #tpu.memory_space<vmem>>, vector<4x256xf32>,
    %c15_i32_82 = arith.constant 15 : i32
    %124 = tpu.dynamic_rotate %113 by %c15_i32_82 dim 1 : vector<4x256xf32>, i32 -> vector<4x256xf32>
    %c2_83 = arith.constant 2 : index
    %c0_84 = arith.constant 0 : index
    %125 = vector.load %arg8[%c2_83, %c0_84] : memref<9x256xf32, #tpu.memory_space<vmem>>, vector<1x256xf32>
    %126 = vector.broadcast %125 : vector<1x256xf32> to vector<4x256xf32>
    %127 = arith.mulf %124, %126 : vector<4x256xf32>
    %c20_85 = arith.constant 20 : index
    %c0_86 = arith.constant 0 : index
    %128 = vector.load %arg10[%c20_85, %c0_86] : memref<108x256xf32, #tpu.memory_space<vmem>>, vector<4x256xf32>
    tpu.vector_store %arg10[%c20_85, %c0_86], %127 {strides = array<i32>} : memref<108x256xf32, #tpu.memory_space<vmem>>, vector<4x256xf32>,
    %c1_i32_87 = arith.constant 1 : i32
    %129 = tpu.dynamic_rotate %113 by %c1_i32_87 dim 1 : vector<4x256xf32>, i32 -> vector<4x256xf32>
    %c3_88 = arith.constant 3 : index
    %c0_89 = arith.constant 0 : index
    %130 = vector.load %arg8[%c3_88, %c0_89] : memref<9x256xf32, #tpu.memory_space<vmem>>, vector<1x256xf32>
    %131 = vector.broadcast %130 : vector<1x256xf32> to vector<4x256xf32>
    %132 = arith.mulf %129, %131 : vector<4x256xf32>
    %c28_90 = arith.constant 28 : index
    %c0_91 = arith.constant 0 : index
    %133 = vector.load %arg10[%c28_90, %c0_91] : memref<108x256xf32, #tpu.memory_space<vmem>>, vector<4x256xf32>
    tpu.vector_store %arg10[%c28_90, %c0_91], %132 {strides = array<i32>} : memref<108x256xf32, #tpu.memory_space<vmem>>, vector<4x256xf32>,
    %c36 = arith.constant 36 : index
    %c0_92 = arith.constant 0 : index
    %134 = vector.load %arg10[%c36, %c0_92] : memref<108x256xf32, #tpu.memory_space<vmem>>, vector<4x256xf32>
    tpu.vector_store %arg10[%c36, %c0_92], %113 {strides = array<i32>} : memref<108x256xf32, #tpu.memory_space<vmem>>, vector<4x256xf32>,
    %c255_i32_93 = arith.constant 255 : i32
    %135 = tpu.dynamic_rotate %113 by %c255_i32_93 dim 1 : vector<4x256xf32>, i32 -> vector<4x256xf32>
    %c5_94 = arith.constant 5 : index
    %c0_95 = arith.constant 0 : index
    %136 = vector.load %arg8[%c5_94, %c0_95] : memref<9x256xf32, #tpu.memory_space<vmem>>, vector<1x256xf32>
    %137 = vector.broadcast %136 : vector<1x256xf32> to vector<4x256xf32>
    %138 = arith.mulf %135, %137 : vector<4x256xf32>
    %c44 = arith.constant 44 : index
    %c0_96 = arith.constant 0 : index
    %139 = vector.load %arg10[%c44, %c0_96] : memref<108x256xf32, #tpu.memory_space<vmem>>, vector<4x256xf32>
    tpu.vector_store %arg10[%c44, %c0_96], %138 {strides = array<i32>} : memref<108x256xf32, #tpu.memory_space<vmem>>, vector<4x256xf32>,
    %c241_i32_97 = arith.constant 241 : i32
    %140 = tpu.dynamic_rotate %113 by %c241_i32_97 dim 1 : vector<4x256xf32>, i32 -> vector<4x256xf32>
    %c6_98 = arith.constant 6 : index
    %c0_99 = arith.constant 0 : index
    %141 = vector.load %arg8[%c6_98, %c0_99] : memref<9x256xf32, #tpu.memory_space<vmem>>, vector<1x256xf32>
    %142 = vector.broadcast %141 : vector<1x256xf32> to vector<4x256xf32>
    %143 = arith.mulf %140, %142 : vector<4x256xf32>
    %c52 = arith.constant 52 : index
    %c0_100 = arith.constant 0 : index
    %144 = vector.load %arg10[%c52, %c0_100] : memref<108x256xf32, #tpu.memory_space<vmem>>, vector<4x256xf32>
    tpu.vector_store %arg10[%c52, %c0_100], %143 {strides = array<i32>} : memref<108x256xf32, #tpu.memory_space<vmem>>, vector<4x256xf32>,
    %c240_i32_101 = arith.constant 240 : i32
    %145 = tpu.dynamic_rotate %113 by %c240_i32_101 dim 1 : vector<4x256xf32>, i32 -> vector<4x256xf32>
    %c7_102 = arith.constant 7 : index
    %c0_103 = arith.constant 0 : index
    %146 = vector.load %arg8[%c7_102, %c0_103] : memref<9x256xf32, #tpu.memory_space<vmem>>, vector<1x256xf32>
    %147 = vector.broadcast %146 : vector<1x256xf32> to vector<4x256xf32>
    %148 = arith.mulf %145, %147 : vector<4x256xf32>
    %c60 = arith.constant 60 : index
    %c0_104 = arith.constant 0 : index
    %149 = vector.load %arg10[%c60, %c0_104] : memref<108x256xf32, #tpu.memory_space<vmem>>, vector<4x256xf32>
    tpu.vector_store %arg10[%c60, %c0_104], %148 {strides = array<i32>} : memref<108x256xf32, #tpu.memory_space<vmem>>, vector<4x256xf32>,
    %c239_i32_105 = arith.constant 239 : i32
    %150 = tpu.dynamic_rotate %113 by %c239_i32_105 dim 1 : vector<4x256xf32>, i32 -> vector<4x256xf32>
    %c8_106 = arith.constant 8 : index
    %c0_107 = arith.constant 0 : index
    %151 = vector.load %arg8[%c8_106, %c0_107] : memref<9x256xf32, #tpu.memory_space<vmem>>, vector<1x256xf32>
    %152 = vector.broadcast %151 : vector<1x256xf32> to vector<4x256xf32>
    %153 = arith.mulf %150, %152 : vector<4x256xf32>
    %c68 = arith.constant 68 : index
    %c0_108 = arith.constant 0 : index
    %154 = vector.load %arg10[%c68, %c0_108] : memref<108x256xf32, #tpu.memory_space<vmem>>, vector<4x256xf32>
    tpu.vector_store %arg10[%c68, %c0_108], %153 {strides = array<i32>} : memref<108x256xf32, #tpu.memory_space<vmem>>, vector<4x256xf32>,
    %c0_109 = arith.constant 0 : index
    %c0_110 = arith.constant 0 : index
    %155 = vector.load %arg4[%c0_109, %c0_110] : memref<4x72xf32, #tpu.memory_space<vmem>>, vector<4x72xf32>
    %c0_111 = arith.constant 0 : index
    %c0_112 = arith.constant 0 : index
    %156 = vector.load %arg10[%c0_111, %c0_112] : memref<108x256xf32, #tpu.memory_space<vmem>>, vector<72x256xf32>
    %cst_113 = arith.constant dense<0.000000e+00> : vector<4x256xf32>
    %157 = tpu.matmul %155, %156, %cst_113 {dimension_numbers = #tpu.dot_dimension_numbers<[1], [0], [0], [1], [0, 0, 1, 1], [], []>} : vector<4x72xf32>, vector<72x256xf32>, vector<4x256xf32> -> vector<4x256xf32>
    %158 = vector.extract_strided_slice %0 {offsets = [0, 3], sizes = [4, 1], strides = [1, 1]} : vector<16x32xf32> to vector<4x1xf32>
    %159 = vector.extract_strided_slice %0 {offsets = [0, 13], sizes = [4, 1], strides = [1, 1]} : vector<16x32xf32> to vector<4x1xf32>
    %160 = vector.broadcast %158 : vector<4x1xf32> to vector<4x256xf32>
    %161 = arith.mulf %4, %160 : vector<4x256xf32>
    %162 = vector.broadcast %159 : vector<4x1xf32> to vector<4x256xf32>
    %163 = arith.addf %161, %162 : vector<4x256xf32>
    %cst_114 = arith.constant 0.000000e+00 : f32
    %164 = vector.broadcast %cst_114 : f32 to vector<4x256xf32>
    %165 = arith.maximumf %163, %164 : vector<4x256xf32>
    %c17_i32_115 = arith.constant 17 : i32
    %166 = tpu.dynamic_rotate %165 by %c17_i32_115 dim 1 : vector<4x256xf32>, i32 -> vector<4x256xf32>
    %c0_116 = arith.constant 0 : index
    %c0_117 = arith.constant 0 : index
    %167 = vector.load %arg8[%c0_116, %c0_117] : memref<9x256xf32, #tpu.memory_space<vmem>>, vector<1x256xf32>
    %168 = vector.broadcast %167 : vector<1x256xf32> to vector<4x256xf32>
    %169 = arith.mulf %166, %168 : vector<4x256xf32>
    %c0_118 = arith.constant 0 : index
    %c0_119 = arith.constant 0 : index
    %170 = vector.load %arg10[%c0_118, %c0_119] : memref<108x256xf32, #tpu.memory_space<vmem>>, vector<4x256xf32>
    tpu.vector_store %arg10[%c0_118, %c0_119], %169 {strides = array<i32>} : memref<108x256xf32, #tpu.memory_space<vmem>>, vector<4x256xf32>,
    %c16_i32_120 = arith.constant 16 : i32
    %171 = tpu.dynamic_rotate %165 by %c16_i32_120 dim 1 : vector<4x256xf32>, i32 -> vector<4x256xf32>
    %c1_121 = arith.constant 1 : index
    %c0_122 = arith.constant 0 : index
    %172 = vector.load %arg8[%c1_121, %c0_122] : memref<9x256xf32, #tpu.memory_space<vmem>>, vector<1x256xf32>
    %173 = vector.broadcast %172 : vector<1x256xf32> to vector<4x256xf32>
    %174 = arith.mulf %171, %173 : vector<4x256xf32>
    %c12_123 = arith.constant 12 : index
    %c0_124 = arith.constant 0 : index
    %175 = vector.load %arg10[%c12_123, %c0_124] : memref<108x256xf32, #tpu.memory_space<vmem>>, vector<4x256xf32>
    tpu.vector_store %arg10[%c12_123, %c0_124], %174 {strides = array<i32>} : memref<108x256xf32, #tpu.memory_space<vmem>>, vector<4x256xf32>,
    %c15_i32_125 = arith.constant 15 : i32
    %176 = tpu.dynamic_rotate %165 by %c15_i32_125 dim 1 : vector<4x256xf32>, i32 -> vector<4x256xf32>
    %c2_126 = arith.constant 2 : index
    %c0_127 = arith.constant 0 : index
    %177 = vector.load %arg8[%c2_126, %c0_127] : memref<9x256xf32, #tpu.memory_space<vmem>>, vector<1x256xf32>
    %178 = vector.broadcast %177 : vector<1x256xf32> to vector<4x256xf32>
    %179 = arith.mulf %176, %178 : vector<4x256xf32>
    %c24_128 = arith.constant 24 : index
    %c0_129 = arith.constant 0 : index
    %180 = vector.load %arg10[%c24_128, %c0_129] : memref<108x256xf32, #tpu.memory_space<vmem>>, vector<4x256xf32>
    tpu.vector_store %arg10[%c24_128, %c0_129], %179 {strides = array<i32>} : memref<108x256xf32, #tpu.memory_space<vmem>>, vector<4x256xf32>,
    %c1_i32_130 = arith.constant 1 : i32
    %181 = tpu.dynamic_rotate %165 by %c1_i32_130 dim 1 : vector<4x256xf32>, i32 -> vector<4x256xf32>
    %c3_131 = arith.constant 3 : index
    %c0_132 = arith.constant 0 : index
    %182 = vector.load %arg8[%c3_131, %c0_132] : memref<9x256xf32, #tpu.memory_space<vmem>>, vector<1x256xf32>
    %183 = vector.broadcast %182 : vector<1x256xf32> to vector<4x256xf32>
    %184 = arith.mulf %181, %183 : vector<4x256xf32>
    %c36_133 = arith.constant 36 : index
    %c0_134 = arith.constant 0 : index
    %185 = vector.load %arg10[%c36_133, %c0_134] : memref<108x256xf32, #tpu.memory_space<vmem>>, vector<4x256xf32>
    tpu.vector_store %arg10[%c36_133, %c0_134], %184 {strides = array<i32>} : memref<108x256xf32, #tpu.memory_space<vmem>>, vector<4x256xf32>,
    %c48_135 = arith.constant 48 : index
    %c0_136 = arith.constant 0 : index
    %186 = vector.load %arg10[%c48_135, %c0_136] : memref<108x256xf32, #tpu.memory_space<vmem>>, vector<4x256xf32>
    tpu.vector_store %arg10[%c48_135, %c0_136], %165 {strides = array<i32>} : memref<108x256xf32, #tpu.memory_space<vmem>>, vector<4x256xf32>,
    %c255_i32_137 = arith.constant 255 : i32
    %187 = tpu.dynamic_rotate %165 by %c255_i32_137 dim 1 : vector<4x256xf32>, i32 -> vector<4x256xf32>
    %c5_138 = arith.constant 5 : index
    %c0_139 = arith.constant 0 : index
    %188 = vector.load %arg8[%c5_138, %c0_139] : memref<9x256xf32, #tpu.memory_space<vmem>>, vector<1x256xf32>
    %189 = vector.broadcast %188 : vector<1x256xf32> to vector<4x256xf32>
    %190 = arith.mulf %187, %189 : vector<4x256xf32>
    %c60_140 = arith.constant 60 : index
    %c0_141 = arith.constant 0 : index
    %191 = vector.load %arg10[%c60_140, %c0_141] : memref<108x256xf32, #tpu.memory_space<vmem>>, vector<4x256xf32>
    tpu.vector_store %arg10[%c60_140, %c0_141], %190 {strides = array<i32>} : memref<108x256xf32, #tpu.memory_space<vmem>>, vector<4x256xf32>,
    %c241_i32_142 = arith.constant 241 : i32
    %192 = tpu.dynamic_rotate %165 by %c241_i32_142 dim 1 : vector<4x256xf32>, i32 -> vector<4x256xf32>
    %c6_143 = arith.constant 6 : index
    %c0_144 = arith.constant 0 : index
    %193 = vector.load %arg8[%c6_143, %c0_144] : memref<9x256xf32, #tpu.memory_space<vmem>>, vector<1x256xf32>
    %194 = vector.broadcast %193 : vector<1x256xf32> to vector<4x256xf32>
    %195 = arith.mulf %192, %194 : vector<4x256xf32>
    %c72 = arith.constant 72 : index
    %c0_145 = arith.constant 0 : index
    %196 = vector.load %arg10[%c72, %c0_145] : memref<108x256xf32, #tpu.memory_space<vmem>>, vector<4x256xf32>
    tpu.vector_store %arg10[%c72, %c0_145], %195 {strides = array<i32>} : memref<108x256xf32, #tpu.memory_space<vmem>>, vector<4x256xf32>,
    %c240_i32_146 = arith.constant 240 : i32
    %197 = tpu.dynamic_rotate %165 by %c240_i32_146 dim 1 : vector<4x256xf32>, i32 -> vector<4x256xf32>
    %c7_147 = arith.constant 7 : index
    %c0_148 = arith.constant 0 : index
    %198 = vector.load %arg8[%c7_147, %c0_148] : memref<9x256xf32, #tpu.memory_space<vmem>>, vector<1x256xf32>
    %199 = vector.broadcast %198 : vector<1x256xf32> to vector<4x256xf32>
    %200 = arith.mulf %197, %199 : vector<4x256xf32>
    %c84 = arith.constant 84 : index
    %c0_149 = arith.constant 0 : index
    %201 = vector.load %arg10[%c84, %c0_149] : memref<108x256xf32, #tpu.memory_space<vmem>>, vector<4x256xf32>
    tpu.vector_store %arg10[%c84, %c0_149], %200 {strides = array<i32>} : memref<108x256xf32, #tpu.memory_space<vmem>>, vector<4x256xf32>,
    %c239_i32_150 = arith.constant 239 : i32
    %202 = tpu.dynamic_rotate %165 by %c239_i32_150 dim 1 : vector<4x256xf32>, i32 -> vector<4x256xf32>
    %c8_151 = arith.constant 8 : index
    %c0_152 = arith.constant 0 : index
    %203 = vector.load %arg8[%c8_151, %c0_152] : memref<9x256xf32, #tpu.memory_space<vmem>>, vector<1x256xf32>
    %204 = vector.broadcast %203 : vector<1x256xf32> to vector<4x256xf32>
    %205 = arith.mulf %202, %204 : vector<4x256xf32>
    %c96 = arith.constant 96 : index
    %c0_153 = arith.constant 0 : index
    %206 = vector.load %arg10[%c96, %c0_153] : memref<108x256xf32, #tpu.memory_space<vmem>>, vector<4x256xf32>
    tpu.vector_store %arg10[%c96, %c0_153], %205 {strides = array<i32>} : memref<108x256xf32, #tpu.memory_space<vmem>>, vector<4x256xf32>,
    %207 = vector.extract_strided_slice %0 {offsets = [0, 4], sizes = [4, 1], strides = [1, 1]} : vector<16x32xf32> to vector<4x1xf32>
    %208 = vector.extract_strided_slice %0 {offsets = [0, 14], sizes = [4, 1], strides = [1, 1]} : vector<16x32xf32> to vector<4x1xf32>
    %209 = vector.broadcast %207 : vector<4x1xf32> to vector<4x256xf32>
    %210 = arith.mulf %56, %209 : vector<4x256xf32>
    %211 = vector.broadcast %208 : vector<4x1xf32> to vector<4x256xf32>
    %212 = arith.addf %210, %211 : vector<4x256xf32>
    %cst_154 = arith.constant 0.000000e+00 : f32
    %213 = vector.broadcast %cst_154 : f32 to vector<4x256xf32>
    %214 = arith.maximumf %212, %213 : vector<4x256xf32>
    %c17_i32_155 = arith.constant 17 : i32
    %215 = tpu.dynamic_rotate %214 by %c17_i32_155 dim 1 : vector<4x256xf32>, i32 -> vector<4x256xf32>
    %c0_156 = arith.constant 0 : index
    %c0_157 = arith.constant 0 : index
    %216 = vector.load %arg8[%c0_156, %c0_157] : memref<9x256xf32, #tpu.memory_space<vmem>>, vector<1x256xf32>
    %217 = vector.broadcast %216 : vector<1x256xf32> to vector<4x256xf32>
    %218 = arith.mulf %215, %217 : vector<4x256xf32>
    %c4_158 = arith.constant 4 : index
    %c0_159 = arith.constant 0 : index
    %219 = vector.load %arg10[%c4_158, %c0_159] : memref<108x256xf32, #tpu.memory_space<vmem>>, vector<4x256xf32>
    tpu.vector_store %arg10[%c4_158, %c0_159], %218 {strides = array<i32>} : memref<108x256xf32, #tpu.memory_space<vmem>>, vector<4x256xf32>,
    %c16_i32_160 = arith.constant 16 : i32
    %220 = tpu.dynamic_rotate %214 by %c16_i32_160 dim 1 : vector<4x256xf32>, i32 -> vector<4x256xf32>
    %c1_161 = arith.constant 1 : index
    %c0_162 = arith.constant 0 : index
    %221 = vector.load %arg8[%c1_161, %c0_162] : memref<9x256xf32, #tpu.memory_space<vmem>>, vector<1x256xf32>
    %222 = vector.broadcast %221 : vector<1x256xf32> to vector<4x256xf32>
    %223 = arith.mulf %220, %222 : vector<4x256xf32>
    %c16_163 = arith.constant 16 : index
    %c0_164 = arith.constant 0 : index
    %224 = vector.load %arg10[%c16_163, %c0_164] : memref<108x256xf32, #tpu.memory_space<vmem>>, vector<4x256xf32>
    tpu.vector_store %arg10[%c16_163, %c0_164], %223 {strides = array<i32>} : memref<108x256xf32, #tpu.memory_space<vmem>>, vector<4x256xf32>,
    %c15_i32_165 = arith.constant 15 : i32
    %225 = tpu.dynamic_rotate %214 by %c15_i32_165 dim 1 : vector<4x256xf32>, i32 -> vector<4x256xf32>
    %c2_166 = arith.constant 2 : index
    %c0_167 = arith.constant 0 : index
    %226 = vector.load %arg8[%c2_166, %c0_167] : memref<9x256xf32, #tpu.memory_space<vmem>>, vector<1x256xf32>
    %227 = vector.broadcast %226 : vector<1x256xf32> to vector<4x256xf32>
    %228 = arith.mulf %225, %227 : vector<4x256xf32>
    %c28_168 = arith.constant 28 : index
    %c0_169 = arith.constant 0 : index
    %229 = vector.load %arg10[%c28_168, %c0_169] : memref<108x256xf32, #tpu.memory_space<vmem>>, vector<4x256xf32>
    tpu.vector_store %arg10[%c28_168, %c0_169], %228 {strides = array<i32>} : memref<108x256xf32, #tpu.memory_space<vmem>>, vector<4x256xf32>,
    %c1_i32_170 = arith.constant 1 : i32
    %230 = tpu.dynamic_rotate %214 by %c1_i32_170 dim 1 : vector<4x256xf32>, i32 -> vector<4x256xf32>
    %c3_171 = arith.constant 3 : index
    %c0_172 = arith.constant 0 : index
    %231 = vector.load %arg8[%c3_171, %c0_172] : memref<9x256xf32, #tpu.memory_space<vmem>>, vector<1x256xf32>
    %232 = vector.broadcast %231 : vector<1x256xf32> to vector<4x256xf32>
    %233 = arith.mulf %230, %232 : vector<4x256xf32>
    %c40_173 = arith.constant 40 : index
    %c0_174 = arith.constant 0 : index
    %234 = vector.load %arg10[%c40_173, %c0_174] : memref<108x256xf32, #tpu.memory_space<vmem>>, vector<4x256xf32>
    tpu.vector_store %arg10[%c40_173, %c0_174], %233 {strides = array<i32>} : memref<108x256xf32, #tpu.memory_space<vmem>>, vector<4x256xf32>,
    %c52_175 = arith.constant 52 : index
    %c0_176 = arith.constant 0 : index
    %235 = vector.load %arg10[%c52_175, %c0_176] : memref<108x256xf32, #tpu.memory_space<vmem>>, vector<4x256xf32>
    tpu.vector_store %arg10[%c52_175, %c0_176], %214 {strides = array<i32>} : memref<108x256xf32, #tpu.memory_space<vmem>>, vector<4x256xf32>,
    %c255_i32_177 = arith.constant 255 : i32
    %236 = tpu.dynamic_rotate %214 by %c255_i32_177 dim 1 : vector<4x256xf32>, i32 -> vector<4x256xf32>
    %c5_178 = arith.constant 5 : index
    %c0_179 = arith.constant 0 : index
    %237 = vector.load %arg8[%c5_178, %c0_179] : memref<9x256xf32, #tpu.memory_space<vmem>>, vector<1x256xf32>
    %238 = vector.broadcast %237 : vector<1x256xf32> to vector<4x256xf32>
    %239 = arith.mulf %236, %238 : vector<4x256xf32>
    %c64_180 = arith.constant 64 : index
    %c0_181 = arith.constant 0 : index
    %240 = vector.load %arg10[%c64_180, %c0_181] : memref<108x256xf32, #tpu.memory_space<vmem>>, vector<4x256xf32>
    tpu.vector_store %arg10[%c64_180, %c0_181], %239 {strides = array<i32>} : memref<108x256xf32, #tpu.memory_space<vmem>>, vector<4x256xf32>,
    %c241_i32_182 = arith.constant 241 : i32
    %241 = tpu.dynamic_rotate %214 by %c241_i32_182 dim 1 : vector<4x256xf32>, i32 -> vector<4x256xf32>
    %c6_183 = arith.constant 6 : index
    %c0_184 = arith.constant 0 : index
    %242 = vector.load %arg8[%c6_183, %c0_184] : memref<9x256xf32, #tpu.memory_space<vmem>>, vector<1x256xf32>
    %243 = vector.broadcast %242 : vector<1x256xf32> to vector<4x256xf32>
    %244 = arith.mulf %241, %243 : vector<4x256xf32>
    %c76 = arith.constant 76 : index
    %c0_185 = arith.constant 0 : index
    %245 = vector.load %arg10[%c76, %c0_185] : memref<108x256xf32, #tpu.memory_space<vmem>>, vector<4x256xf32>
    tpu.vector_store %arg10[%c76, %c0_185], %244 {strides = array<i32>} : memref<108x256xf32, #tpu.memory_space<vmem>>, vector<4x256xf32>,
    %c240_i32_186 = arith.constant 240 : i32
    %246 = tpu.dynamic_rotate %214 by %c240_i32_186 dim 1 : vector<4x256xf32>, i32 -> vector<4x256xf32>
    %c7_187 = arith.constant 7 : index
    %c0_188 = arith.constant 0 : index
    %247 = vector.load %arg8[%c7_187, %c0_188] : memref<9x256xf32, #tpu.memory_space<vmem>>, vector<1x256xf32>
    %248 = vector.broadcast %247 : vector<1x256xf32> to vector<4x256xf32>
    %249 = arith.mulf %246, %248 : vector<4x256xf32>
    %c88 = arith.constant 88 : index
    %c0_189 = arith.constant 0 : index
    %250 = vector.load %arg10[%c88, %c0_189] : memref<108x256xf32, #tpu.memory_space<vmem>>, vector<4x256xf32>
    tpu.vector_store %arg10[%c88, %c0_189], %249 {strides = array<i32>} : memref<108x256xf32, #tpu.memory_space<vmem>>, vector<4x256xf32>,
    %c239_i32_190 = arith.constant 239 : i32
    %251 = tpu.dynamic_rotate %214 by %c239_i32_190 dim 1 : vector<4x256xf32>, i32 -> vector<4x256xf32>
    %c8_191 = arith.constant 8 : index
    %c0_192 = arith.constant 0 : index
    %252 = vector.load %arg8[%c8_191, %c0_192] : memref<9x256xf32, #tpu.memory_space<vmem>>, vector<1x256xf32>
    %253 = vector.broadcast %252 : vector<1x256xf32> to vector<4x256xf32>
    %254 = arith.mulf %251, %253 : vector<4x256xf32>
    %c100 = arith.constant 100 : index
    %c0_193 = arith.constant 0 : index
    %255 = vector.load %arg10[%c100, %c0_193] : memref<108x256xf32, #tpu.memory_space<vmem>>, vector<4x256xf32>
    tpu.vector_store %arg10[%c100, %c0_193], %254 {strides = array<i32>} : memref<108x256xf32, #tpu.memory_space<vmem>>, vector<4x256xf32>,
    %256 = vector.extract_strided_slice %0 {offsets = [0, 5], sizes = [4, 1], strides = [1, 1]} : vector<16x32xf32> to vector<4x1xf32>
    %257 = vector.extract_strided_slice %0 {offsets = [0, 15], sizes = [4, 1], strides = [1, 1]} : vector<16x32xf32> to vector<4x1xf32>
    %258 = vector.broadcast %256 : vector<4x1xf32> to vector<4x256xf32>
    %259 = arith.mulf %157, %258 : vector<4x256xf32>
    %260 = vector.broadcast %257 : vector<4x1xf32> to vector<4x256xf32>
    %261 = arith.addf %259, %260 : vector<4x256xf32>
    %cst_194 = arith.constant 0.000000e+00 : f32
    %262 = vector.broadcast %cst_194 : f32 to vector<4x256xf32>
    %263 = arith.maximumf %261, %262 : vector<4x256xf32>
    %c17_i32_195 = arith.constant 17 : i32
    %264 = tpu.dynamic_rotate %263 by %c17_i32_195 dim 1 : vector<4x256xf32>, i32 -> vector<4x256xf32>
    %c0_196 = arith.constant 0 : index
    %c0_197 = arith.constant 0 : index
    %265 = vector.load %arg8[%c0_196, %c0_197] : memref<9x256xf32, #tpu.memory_space<vmem>>, vector<1x256xf32>
    %266 = vector.broadcast %265 : vector<1x256xf32> to vector<4x256xf32>
    %267 = arith.mulf %264, %266 : vector<4x256xf32>
    %c8_198 = arith.constant 8 : index
    %c0_199 = arith.constant 0 : index
    %268 = vector.load %arg10[%c8_198, %c0_199] : memref<108x256xf32, #tpu.memory_space<vmem>>, vector<4x256xf32>
    tpu.vector_store %arg10[%c8_198, %c0_199], %267 {strides = array<i32>} : memref<108x256xf32, #tpu.memory_space<vmem>>, vector<4x256xf32>,
    %c16_i32_200 = arith.constant 16 : i32
    %269 = tpu.dynamic_rotate %263 by %c16_i32_200 dim 1 : vector<4x256xf32>, i32 -> vector<4x256xf32>
    %c1_201 = arith.constant 1 : index
    %c0_202 = arith.constant 0 : index
    %270 = vector.load %arg8[%c1_201, %c0_202] : memref<9x256xf32, #tpu.memory_space<vmem>>, vector<1x256xf32>
    %271 = vector.broadcast %270 : vector<1x256xf32> to vector<4x256xf32>
    %272 = arith.mulf %269, %271 : vector<4x256xf32>
    %c20_203 = arith.constant 20 : index
    %c0_204 = arith.constant 0 : index
    %273 = vector.load %arg10[%c20_203, %c0_204] : memref<108x256xf32, #tpu.memory_space<vmem>>, vector<4x256xf32>
    tpu.vector_store %arg10[%c20_203, %c0_204], %272 {strides = array<i32>} : memref<108x256xf32, #tpu.memory_space<vmem>>, vector<4x256xf32>,
    %c15_i32_205 = arith.constant 15 : i32
    %274 = tpu.dynamic_rotate %263 by %c15_i32_205 dim 1 : vector<4x256xf32>, i32 -> vector<4x256xf32>
    %c2_206 = arith.constant 2 : index
    %c0_207 = arith.constant 0 : index
    %275 = vector.load %arg8[%c2_206, %c0_207] : memref<9x256xf32, #tpu.memory_space<vmem>>, vector<1x256xf32>
    %276 = vector.broadcast %275 : vector<1x256xf32> to vector<4x256xf32>
    %277 = arith.mulf %274, %276 : vector<4x256xf32>
    %c32_208 = arith.constant 32 : index
    %c0_209 = arith.constant 0 : index
    %278 = vector.load %arg10[%c32_208, %c0_209] : memref<108x256xf32, #tpu.memory_space<vmem>>, vector<4x256xf32>
    tpu.vector_store %arg10[%c32_208, %c0_209], %277 {strides = array<i32>} : memref<108x256xf32, #tpu.memory_space<vmem>>, vector<4x256xf32>,
    %c1_i32_210 = arith.constant 1 : i32
    %279 = tpu.dynamic_rotate %263 by %c1_i32_210 dim 1 : vector<4x256xf32>, i32 -> vector<4x256xf32>
    %c3_211 = arith.constant 3 : index
    %c0_212 = arith.constant 0 : index
    %280 = vector.load %arg8[%c3_211, %c0_212] : memref<9x256xf32, #tpu.memory_space<vmem>>, vector<1x256xf32>
    %281 = vector.broadcast %280 : vector<1x256xf32> to vector<4x256xf32>
    %282 = arith.mulf %279, %281 : vector<4x256xf32>
    %c44_213 = arith.constant 44 : index
    %c0_214 = arith.constant 0 : index
    %283 = vector.load %arg10[%c44_213, %c0_214] : memref<108x256xf32, #tpu.memory_space<vmem>>, vector<4x256xf32>
    tpu.vector_store %arg10[%c44_213, %c0_214], %282 {strides = array<i32>} : memref<108x256xf32, #tpu.memory_space<vmem>>, vector<4x256xf32>,
    %c56_215 = arith.constant 56 : index
    %c0_216 = arith.constant 0 : index
    %284 = vector.load %arg10[%c56_215, %c0_216] : memref<108x256xf32, #tpu.memory_space<vmem>>, vector<4x256xf32>
    tpu.vector_store %arg10[%c56_215, %c0_216], %263 {strides = array<i32>} : memref<108x256xf32, #tpu.memory_space<vmem>>, vector<4x256xf32>,
    %c255_i32_217 = arith.constant 255 : i32
    %285 = tpu.dynamic_rotate %263 by %c255_i32_217 dim 1 : vector<4x256xf32>, i32 -> vector<4x256xf32>
    %c5_218 = arith.constant 5 : index
    %c0_219 = arith.constant 0 : index
    %286 = vector.load %arg8[%c5_218, %c0_219] : memref<9x256xf32, #tpu.memory_space<vmem>>, vector<1x256xf32>
    %287 = vector.broadcast %286 : vector<1x256xf32> to vector<4x256xf32>
    %288 = arith.mulf %285, %287 : vector<4x256xf32>
    %c68_220 = arith.constant 68 : index
    %c0_221 = arith.constant 0 : index
    %289 = vector.load %arg10[%c68_220, %c0_221] : memref<108x256xf32, #tpu.memory_space<vmem>>, vector<4x256xf32>
    tpu.vector_store %arg10[%c68_220, %c0_221], %288 {strides = array<i32>} : memref<108x256xf32, #tpu.memory_space<vmem>>, vector<4x256xf32>,
    %c241_i32_222 = arith.constant 241 : i32
    %290 = tpu.dynamic_rotate %263 by %c241_i32_222 dim 1 : vector<4x256xf32>, i32 -> vector<4x256xf32>
    %c6_223 = arith.constant 6 : index
    %c0_224 = arith.constant 0 : index
    %291 = vector.load %arg8[%c6_223, %c0_224] : memref<9x256xf32, #tpu.memory_space<vmem>>, vector<1x256xf32>
    %292 = vector.broadcast %291 : vector<1x256xf32> to vector<4x256xf32>
    %293 = arith.mulf %290, %292 : vector<4x256xf32>
    %c80 = arith.constant 80 : index
    %c0_225 = arith.constant 0 : index
    %294 = vector.load %arg10[%c80, %c0_225] : memref<108x256xf32, #tpu.memory_space<vmem>>, vector<4x256xf32>
    tpu.vector_store %arg10[%c80, %c0_225], %293 {strides = array<i32>} : memref<108x256xf32, #tpu.memory_space<vmem>>, vector<4x256xf32>,
    %c240_i32_226 = arith.constant 240 : i32
    %295 = tpu.dynamic_rotate %263 by %c240_i32_226 dim 1 : vector<4x256xf32>, i32 -> vector<4x256xf32>
    %c7_227 = arith.constant 7 : index
    %c0_228 = arith.constant 0 : index
    %296 = vector.load %arg8[%c7_227, %c0_228] : memref<9x256xf32, #tpu.memory_space<vmem>>, vector<1x256xf32>
    %297 = vector.broadcast %296 : vector<1x256xf32> to vector<4x256xf32>
    %298 = arith.mulf %295, %297 : vector<4x256xf32>
    %c92 = arith.constant 92 : index
    %c0_229 = arith.constant 0 : index
    %299 = vector.load %arg10[%c92, %c0_229] : memref<108x256xf32, #tpu.memory_space<vmem>>, vector<4x256xf32>
    tpu.vector_store %arg10[%c92, %c0_229], %298 {strides = array<i32>} : memref<108x256xf32, #tpu.memory_space<vmem>>, vector<4x256xf32>,
    %c239_i32_230 = arith.constant 239 : i32
    %300 = tpu.dynamic_rotate %263 by %c239_i32_230 dim 1 : vector<4x256xf32>, i32 -> vector<4x256xf32>
    %c8_231 = arith.constant 8 : index
    %c0_232 = arith.constant 0 : index
    %301 = vector.load %arg8[%c8_231, %c0_232] : memref<9x256xf32, #tpu.memory_space<vmem>>, vector<1x256xf32>
    %302 = vector.broadcast %301 : vector<1x256xf32> to vector<4x256xf32>
    %303 = arith.mulf %300, %302 : vector<4x256xf32>
    %c104 = arith.constant 104 : index
    %c0_233 = arith.constant 0 : index
    %304 = vector.load %arg10[%c104, %c0_233] : memref<108x256xf32, #tpu.memory_space<vmem>>, vector<4x256xf32>
    tpu.vector_store %arg10[%c104, %c0_233], %303 {strides = array<i32>} : memref<108x256xf32, #tpu.memory_space<vmem>>, vector<4x256xf32>,
    %c0_234 = arith.constant 0 : index
    %c0_235 = arith.constant 0 : index
    %305 = vector.load %arg5[%c0_234, %c0_235] : memref<4x108xf32, #tpu.memory_space<vmem>>, vector<4x108xf32>
    %c0_236 = arith.constant 0 : index
    %c0_237 = arith.constant 0 : index
    %306 = vector.load %arg10[%c0_236, %c0_237] : memref<108x256xf32, #tpu.memory_space<vmem>>, vector<108x256xf32>
    %cst_238 = arith.constant dense<0.000000e+00> : vector<4x256xf32>
    %307 = tpu.matmul %305, %306, %cst_238 {dimension_numbers = #tpu.dot_dimension_numbers<[1], [0], [0], [1], [0, 0, 1, 1], [], []>} : vector<4x108xf32>, vector<108x256xf32>, vector<4x256xf32> -> vector<4x256xf32>
    %308 = vector.extract_strided_slice %0 {offsets = [0, 6], sizes = [4, 1], strides = [1, 1]} : vector<16x32xf32> to vector<4x1xf32>
    %309 = vector.extract_strided_slice %0 {offsets = [0, 16], sizes = [4, 1], strides = [1, 1]} : vector<16x32xf32> to vector<4x1xf32>
    %310 = vector.broadcast %308 : vector<4x1xf32> to vector<4x256xf32>
    %311 = arith.mulf %4, %310 : vector<4x256xf32>
    %312 = vector.broadcast %309 : vector<4x1xf32> to vector<4x256xf32>
    %313 = arith.addf %311, %312 : vector<4x256xf32>
    %cst_239 = arith.constant 0.000000e+00 : f32
    %314 = vector.broadcast %cst_239 : f32 to vector<4x256xf32>
    %315 = arith.maximumf %313, %314 : vector<4x256xf32>
    %c0_240 = arith.constant 0 : index
    %c0_241 = arith.constant 0 : index
    %316 = vector.load %arg10[%c0_240, %c0_241] : memref<108x256xf32, #tpu.memory_space<vmem>>, vector<4x256xf32>
    tpu.vector_store %arg10[%c0_240, %c0_241], %315 {strides = array<i32>} : memref<108x256xf32, #tpu.memory_space<vmem>>, vector<4x256xf32>,
    %317 = vector.extract_strided_slice %0 {offsets = [0, 7], sizes = [4, 1], strides = [1, 1]} : vector<16x32xf32> to vector<4x1xf32>
    %318 = vector.extract_strided_slice %0 {offsets = [0, 17], sizes = [4, 1], strides = [1, 1]} : vector<16x32xf32> to vector<4x1xf32>
    %319 = vector.broadcast %317 : vector<4x1xf32> to vector<4x256xf32>
    %320 = arith.mulf %56, %319 : vector<4x256xf32>
    %321 = vector.broadcast %318 : vector<4x1xf32> to vector<4x256xf32>
    %322 = arith.addf %320, %321 : vector<4x256xf32>
    %cst_242 = arith.constant 0.000000e+00 : f32
    %323 = vector.broadcast %cst_242 : f32 to vector<4x256xf32>
    %324 = arith.maximumf %322, %323 : vector<4x256xf32>
    %c4_243 = arith.constant 4 : index
    %c0_244 = arith.constant 0 : index
    %325 = vector.load %arg10[%c4_243, %c0_244] : memref<108x256xf32, #tpu.memory_space<vmem>>, vector<4x256xf32>
    tpu.vector_store %arg10[%c4_243, %c0_244], %324 {strides = array<i32>} : memref<108x256xf32, #tpu.memory_space<vmem>>, vector<4x256xf32>,
    %326 = vector.extract_strided_slice %0 {offsets = [0, 8], sizes = [4, 1], strides = [1, 1]} : vector<16x32xf32> to vector<4x1xf32>
    %327 = vector.extract_strided_slice %0 {offsets = [0, 18], sizes = [4, 1], strides = [1, 1]} : vector<16x32xf32> to vector<4x1xf32>
    %328 = vector.broadcast %326 : vector<4x1xf32> to vector<4x256xf32>
    %329 = arith.mulf %157, %328 : vector<4x256xf32>
    %330 = vector.broadcast %327 : vector<4x1xf32> to vector<4x256xf32>
    %331 = arith.addf %329, %330 : vector<4x256xf32>
    %cst_245 = arith.constant 0.000000e+00 : f32
    %332 = vector.broadcast %cst_245 : f32 to vector<4x256xf32>
    %333 = arith.maximumf %331, %332 : vector<4x256xf32>
    %c8_246 = arith.constant 8 : index
    %c0_247 = arith.constant 0 : index
    %334 = vector.load %arg10[%c8_246, %c0_247] : memref<108x256xf32, #tpu.memory_space<vmem>>, vector<4x256xf32>
    tpu.vector_store %arg10[%c8_246, %c0_247], %333 {strides = array<i32>} : memref<108x256xf32, #tpu.memory_space<vmem>>, vector<4x256xf32>,
    %335 = vector.extract_strided_slice %0 {offsets = [0, 9], sizes = [4, 1], strides = [1, 1]} : vector<16x32xf32> to vector<4x1xf32>
    %336 = vector.extract_strided_slice %0 {offsets = [0, 19], sizes = [4, 1], strides = [1, 1]} : vector<16x32xf32> to vector<4x1xf32>
    %337 = vector.broadcast %335 : vector<4x1xf32> to vector<4x256xf32>
    %338 = arith.mulf %307, %337 : vector<4x256xf32>
    %339 = vector.broadcast %336 : vector<4x1xf32> to vector<4x256xf32>
    %340 = arith.addf %338, %339 : vector<4x256xf32>
    %cst_248 = arith.constant 0.000000e+00 : f32
    %341 = vector.broadcast %cst_248 : f32 to vector<4x256xf32>
    %342 = arith.maximumf %340, %341 : vector<4x256xf32>
    %c12_249 = arith.constant 12 : index
    %c0_250 = arith.constant 0 : index
    %343 = vector.load %arg10[%c12_249, %c0_250] : memref<108x256xf32, #tpu.memory_space<vmem>>, vector<4x256xf32>
    tpu.vector_store %arg10[%c12_249, %c0_250], %342 {strides = array<i32>} : memref<108x256xf32, #tpu.memory_space<vmem>>, vector<4x256xf32>,
    %c0_251 = arith.constant 0 : index
    %c0_252 = arith.constant 0 : index
    %344 = vector.load %arg6[%c0_251, %c0_252] : memref<16x16xf32, #tpu.memory_space<vmem>>, vector<16x16xf32>
    %c0_253 = arith.constant 0 : index
    %c0_254 = arith.constant 0 : index
    %345 = vector.load %arg10[%c0_253, %c0_254] : memref<108x256xf32, #tpu.memory_space<vmem>>, vector<16x256xf32>
    %cst_255 = arith.constant dense<0.000000e+00> : vector<16x256xf32>
    %346 = tpu.matmul %344, %345, %cst_255 {dimension_numbers = #tpu.dot_dimension_numbers<[1], [0], [0], [1], [0, 0, 1, 1], [], []>} : vector<16x16xf32>, vector<16x256xf32>, vector<16x256xf32> -> vector<16x256xf32>
    %347 = vector.extract_strided_slice %0 {offsets = [0, 20], sizes = [16, 1], strides = [1, 1]} : vector<16x32xf32> to vector<16x1xf32>
    %348 = vector.broadcast %347 : vector<16x1xf32> to vector<16x256xf32>
    %349 = arith.addf %346, %348 : vector<16x256xf32>
    %c0_256 = arith.constant 0 : index
    %c0_257 = arith.constant 0 : index
    %c0_258 = arith.constant 0 : index
    %350 = vector.load %arg9[%c0_256, %c0_257, %c0_258] : memref<1x16x256xf32, #tpu.memory_space<vmem>>, vector<1x16x256xf32>
    %351 = vector.shape_cast %350 : vector<1x16x256xf32> to vector<16x256xf32>
    %352 = vector.shape_cast %349 : vector<16x256xf32> to vector<1x16x256xf32>
    tpu.vector_store %arg9[%c0_256, %c0_257, %c0_258], %352 {strides = array<i32>} : memref<1x16x256xf32, #tpu.memory_space<vmem>>, vector<1x16x256xf32>,
    return
  }
  func.func @transform_0(%arg0: i32) -> (i32, i32, i32) {
    %c0_i32 = arith.constant 0 : i32
    %c0_i32_0 = arith.constant 0 : i32
    %c0_i32_1 = arith.constant 0 : i32
    return %arg0, %c0_i32, %c0_i32_0 : i32, i32, i32
  }
  func.func @transform_1(%arg0: i32) -> (i32, i32) {
    %c0_i32 = arith.constant 0 : i32
    %c0_i32_0 = arith.constant 0 : i32
    %c0_i32_1 = arith.constant 0 : i32
    return %c0_i32, %c0_i32_0 : i32, i32
  }
  func.func @transform_2(%arg0: i32) -> (i32, i32) {
    %c0_i32 = arith.constant 0 : i32
    %c0_i32_0 = arith.constant 0 : i32
    %c0_i32_1 = arith.constant 0 : i32
    return %c0_i32, %c0_i32_0 : i32, i32
  }
  func.func @transform_3(%arg0: i32) -> (i32, i32) {
    %c0_i32 = arith.constant 0 : i32
    %c0_i32_0 = arith.constant 0 : i32
    %c0_i32_1 = arith.constant 0 : i32
    return %c0_i32, %c0_i32_0 : i32, i32
  }
  func.func @transform_4(%arg0: i32) -> (i32, i32) {
    %c0_i32 = arith.constant 0 : i32
    %c0_i32_0 = arith.constant 0 : i32
    %c0_i32_1 = arith.constant 0 : i32
    return %c0_i32, %c0_i32_0 : i32, i32
  }
  func.func @transform_5(%arg0: i32) -> (i32, i32) {
    %c0_i32 = arith.constant 0 : i32
    %c0_i32_0 = arith.constant 0 : i32
    %c0_i32_1 = arith.constant 0 : i32
    return %c0_i32, %c0_i32_0 : i32, i32
  }
  func.func @transform_6(%arg0: i32) -> (i32, i32) {
    %c0_i32 = arith.constant 0 : i32
    %c0_i32_0 = arith.constant 0 : i32
    %c0_i32_1 = arith.constant 0 : i32
    return %c0_i32, %c0_i32_0 : i32, i32
  }
  func.func @transform_7(%arg0: i32) -> (i32, i32) {
    %c0_i32 = arith.constant 0 : i32
    %c0_i32_0 = arith.constant 0 : i32
    %c0_i32_1 = arith.constant 0 : i32
    return %c0_i32, %c0_i32_0 : i32, i32
  }
  func.func @transform_8(%arg0: i32) -> (i32, i32, i32) {
    %c0_i32 = arith.constant 0 : i32
    %c0_i32_0 = arith.constant 0 : i32
    %c0_i32_1 = arith.constant 0 : i32
    return %arg0, %c0_i32, %c0_i32_0 : i32, i32, i32
  }
}

</mosaic_0001>

<bundles_post_ra>
// kernel: sub.5
= control target key start
LH: loop header
LB: loop body
LE: loop exit
PB: predicated region body
PF: predicated region fallthrough
CT: control target
= control target key end

     0   :  { %s364_s0 = inlined_call_operand.vmem [shape: f32[2,4,16,16], index: 0, kind: input, shape index: {}]   ;;  %s365_s1 = inlined_call_operand.vmem [shape: f32[2,4,16,16], index: 1, kind: input, shape index: {}]   ;;  %s366_s2 = inlined_call_operand.vmem [shape: f32[2,4,16,16], index: 2, kind: output, shape index: {}]  }
   0x1   :  { %v3_v0 = vld [vmem:[%s364_s0] sm:$0xff]  ;;  %v163_v5 = vld [vmem:[%s364_s0 + $0x10] sm:$0xff]  ;;  %v181_v23 = vld [vmem:[%s364_s0 + $0x8] sm:$0xff] }
   0x2   :  { %v4_v1 = vld [vmem:[%s365_s1] sm:$0xff]  ;;  %v164_v6 = vld [vmem:[%s365_s1 + $0x10] sm:$0xff]  ;;  %v182_v24 = vld [vmem:[%s365_s1 + $0x8] sm:$0xff] }
   0x3   :  { %v160_v2 = vld [vmem:[%s364_s0 + $0x40] sm:$0xff]  ;;  %v7_v3 = vsub.f32 %v3_v0, %v4_v1  ;;  %v26_v8 = vsub.f32 %v163_v5, %v164_v6  ;;  %v166_v9 = vld [vmem:[%s364_s0 + $0x50] sm:$0xff]  ;;  %v86_v26 = vsub.f32 %v181_v23, %v182_v24  ;;  %v184_v27 = vld [vmem:[%s364_s0 + $0x48] sm:$0xff] }
   0x4   :  { %v161_v4 = vld [vmem:[%s365_s1 + $0x40] sm:$0xff]  ;;  %v167_v10 = vld [vmem:[%s365_s1 + $0x50] sm:$0xff]  ;;  %v185_v28 = vld [vmem:[%s365_s1 + $0x48] sm:$0xff] }
   0x5   :  { %v16_v7 = vsub.f32 %v160_v2, %v161_v4  ;;  %v169_v11 = vld [vmem:[%s364_s0 + $0x20] sm:$0xff]  ;;  %9 = vst [vmem:[%s366_s2] sm:$0xff] %v7_v3  ;;  %v36_v12 = vsub.f32 %v166_v9, %v167_v10  ;;  %165 = vst [vmem:[%s366_s2 + $0x10] sm:$0xff] %v26_v8  ;;  %v175_v18 = vld [vmem:[%s364_s0 + $0x30] sm:$0xff]  ;;  %v96_v30 = vsub.f32 %v184_v27, %v185_v28 }
   0x6   :  { %v170_v13 = vld [vmem:[%s365_s1 + $0x20] sm:$0xff]  ;;  %v176_v19 = vld [vmem:[%s365_s1 + $0x30] sm:$0xff]  ;;  %v187_v29 = vld [vmem:[%s364_s0 + $0x18] sm:$0xff]  ;;  %183 = vst [vmem:[%s366_s2 + $0x8] sm:$0xff] %v86_v26 }
   0x7   :  { %v172_v14 = vld [vmem:[%s364_s0 + $0x60] sm:$0xff]  ;;  %162 = vst [vmem:[%s366_s2 + $0x40] sm:$0xff] %v16_v7  ;;  %v46_v16 = vsub.f32 %v169_v11, %v170_v13  ;;  %v178_v20 = vld [vmem:[%s364_s0 + $0x70] sm:$0xff]  ;;  %168 = vst [vmem:[%s366_s2 + $0x50] sm:$0xff] %v36_v12  ;;  %v66_v21 = vsub.f32 %v175_v18, %v176_v19 }
   0x8   :  { %v173_v15 = vld [vmem:[%s365_s1 + $0x60] sm:$0xff]  ;;  %v179_v22 = vld [vmem:[%s365_s1 + $0x70] sm:$0xff]  ;;  %v188_v31 = vld [vmem:[%s365_s1 + $0x18] sm:$0xff]  ;;  %186 = vst [vmem:[%s366_s2 + $0x48] sm:$0xff] %v96_v30 }
   0x9   :  { %v56_v17 = vsub.f32 %v172_v14, %v173_v15  ;;  %171 = vst [vmem:[%s366_s2 + $0x20] sm:$0xff] %v46_v16  ;;  %v76_v25 = vsub.f32 %v178_v20, %v179_v22  ;;  %177 = vst [vmem:[%s366_s2 + $0x30] sm:$0xff] %v66_v21  ;;  %v190_v32 = vld [vmem:[%s364_s0 + $0x58] sm:$0xff]  ;;  %v106_v34 = vsub.f32 %v187_v29, %v188_v31  ;;  %v193_v36 = vld [vmem:[%s364_s0 + $0x28] sm:$0xff] }
   0xa   :  { %v191_v33 = vld [vmem:[%s365_s1 + $0x58] sm:$0xff]  ;;  %v194_v37 = vld [vmem:[%s365_s1 + $0x28] sm:$0xff] }
   0xb   :  { %174 = vst [vmem:[%s366_s2 + $0x60] sm:$0xff] %v56_v17  ;;  %180 = vst [vmem:[%s366_s2 + $0x70] sm:$0xff] %v76_v25  ;;  %v116_v35 = vsub.f32 %v190_v32, %v191_v33  ;;  %v196_v38 = vld [vmem:[%s364_s0 + $0x68] sm:$0xff]  ;;  %v126_v39 = vsub.f32 %v193_v36, %v194_v37  ;;  %v199_v41 = vld [vmem:[%s364_s0 + $0x38] sm:$0xff] }
   0xc   :  { %v197_v40 = vld [vmem:[%s365_s1 + $0x68] sm:$0xff]  ;;  %v200_v42 = vld [vmem:[%s365_s1 + $0x38] sm:$0xff]  ;;  %189 = vst [vmem:[%s366_s2 + $0x18] sm:$0xff] %v106_v34 }
   0xd   :  { %192 = vst [vmem:[%s366_s2 + $0x58] sm:$0xff] %v116_v35  ;;  %v136_v43 = vsub.f32 %v196_v38, %v197_v40  ;;  %v146_v44 = vsub.f32 %v199_v41, %v200_v42  ;;  %v202_v45 = vld [vmem:[%s364_s0 + $0x78] sm:$0xff]  ;;  %195 = vst [vmem:[%s366_s2 + $0x28] sm:$0xff] %v126_v39 }
   0xe   :  { %v203_v46 = vld [vmem:[%s365_s1 + $0x78] sm:$0xff] }
   0xf   :  { %v156_v47 = vsub.f32 %v202_v45, %v203_v46  ;;  %198 = vst [vmem:[%s366_s2 + $0x68] sm:$0xff] %v136_v43  ;;  %201 = vst [vmem:[%s366_s2 + $0x38] sm:$0xff] %v146_v44 }
  0x11   :  { %204 = vst [vmem:[%s366_s2 + $0x78] sm:$0xff] %v156_v47 }

// kernel: _lambda_.1
= control target key start
LH: loop header
LB: loop body
LE: loop exit
PB: predicated region body
PF: predicated region fallthrough
CT: control target
= control target key end

     0   :  { %s2520_s27 = smov 0   ;;  %s3234_s0 = inlined_call_operand.vmem [shape: f32[2,4,256], index: 0, kind: input, shape index: {}]   ;;  %s3235_s1 = inlined_call_operand.vmem [shape: f32[4,4], index: 1, kind: input, shape index: {}]   ;;  %s3236_s2 = inlined_call_operand.vmem [shape: f32[4,36], index: 2, kind: input, shape index: {}]   ;;  %s3237_s3 = inlined_call_operand.vmem [shape: f32[4,72], index: 3, kind: input, shape index: {}]   ;;  %s3238_s4 = inlined_call_operand.vmem [shape: f32[4,108], index: 4, kind: input, shape index: {}]   ;;  %s3239_s5 = inlined_call_operand.vmem [shape: f32[16,16], index: 5, kind: input, shape index: {}]   ;;  %s3240_s6 = inlined_call_operand.vmem [shape: f32[16,32], index: 6, kind: input, shape index: {}]   ;;  %s3241_s7 = inlined_call_operand.vmem [shape: f32[9,256], index: 7, kind: input, shape index: {}]   ;;  %s3242_s8 = inlined_call_operand.vmem [shape: f32[2,16,256], index: 8, kind: output, shape index: {}]  }
   0x1 LB: > { %s2248_s28 = sadd.s32 4294967295, %s2442_s27   ;;  %p2252_p0 = scmp.ge.s32.totalorder %s2442_s27, 1  ;;  %s2442_s27 = sphi %s2520_s27, %s18_s27  }
   0x2   : > { %p262_p1 = scmp.lt.s32.totalorder %s2442_s27, 3 }
   0x4   : > { %p263_p2 = pnand %p2252_p0, %p262_p1 }
   0x5   : > { %p296_p3 = scmp.lt.s32.totalorder (!%p263_p2), %s2248_s28, 1  ;;  %v2444_v0 = vmov (!%p263_p2), 0.0   ;;  %v2532_v1 = vld [vmem:[%s3240_s6] sm:$0xff] (!%p263_p2)  ;;  %v2445_v2 = vmov (!%p263_p2), 0   ;;  %vm316_vm0 = vcmask (!%p263_p2), 1043456   ;;  %v2446_v5 = vmov (!%p263_p2), 10  }
   0x6   : > { %266 = sbr.rel (%p263_p2) target bundleno = 1614 (0x64e), region = 52  ;;  %385 = vmatprep.mubr.f32.mxu0 (!%p263_p2), %v2444_v0  ;;  %711 = vmatprep.mubr.f32.mxu1 (!%p263_p2), %v2444_v0  ;;  %v309_v6 = vld [vmem:[%s3235_s1] sm:$0xf] (!%p263_p2)  ;;  %vm312_vm1 = vcmask (!%p263_p2), 31744   ;;  %v2447_v7 = vmov (!%p263_p2), 1   ;;  %v2448_v8 = vmov (!%p263_p2), 2   ;;  %v411_v21 = vlaneseq (!%p263_p2) }
   0x7   : > { %2412 = vset.pattern.permute.xlu0 (!%p263_p2), %v2445_v2  ;;  %2414 = vset.pattern.permute.xlu1 (!%p263_p2), %v2448_v8  ;;  %s2449_s15 = smov (!%p263_p2), 16   ;;  %s2450_s16 = smov (!%p263_p2), 1   ;;  %v2457_v19 = vmov (!%p263_p2), 12   ;;  %v2458_v20 = vmov (!%p263_p2), 11   ;;  %vm637_vm10 = vcmask (!%p263_p2), 293888   ;;  %vm1175_vm11 = vcmask (!%p263_p2), 588800  }
   0x8   : > { %394 = vperm.xlu0 (!%p263_p2), %2412, %v2532_v1   ;;  %s2451_s17 = smov (!%p263_p2), 17   ;;  %s2452_s18 = smov (!%p263_p2), 15   ;;  %v419_v22 = vshrl.u32 (!%p263_p2), %v411_v21, 7  ;;  %v2575_v23 = vand.u32 (!%p263_p2), 127, %v411_v21  ;;  %vm2473_vm12 = vmmov (!%p263_p2), 1   ;;  %vm1933_vm14 = vcmask (!%p263_p2), 883712  }
   0x9   : > { %s2453_s19 = smov (!%p263_p2), 127   ;;  %s2454_s20 = smov (!%p263_p2), 112   ;;  %v2262_v26 = vld [vmem:[%s3241_s7 + $0x3] ss:$8 sm:$0x3] (!%p263_p2)  ;;  %vm2364_vm13 = vmpackc.low (!%p263_p2), %vm316_vm0, %vm2473_vm12  ;;  %vm2105_vm15 = vcmask (!%p263_p2), 130048  }
   0xa   : > { %s2455_s21 = smov (!%p263_p2), 113   ;;  %s2456_s22 = smov (!%p263_p2), 111   ;;  %v2577_v24 = vsub.s32 (!%p263_p2), 0, %v419_v22  ;;  %v2579_v25 = vsub.s32 (!%p263_p2), 1, %v419_v22  ;;  %vm490_vm2 = vcmp.lt.s32.totalorder (!%p263_p2), %v2575_v23, 1  ;;  %vm413_vm3 = vcmp.lt.s32.totalorder (!%p263_p2), %v2575_v23, 17 }
   0xb   : > { %v416_v31 = vld [vmem:[%s3241_s7] ss:$8 sm:$0x3] (!%p263_p2)  ;;  %v2261_v40 = vld [vmem:[%s3241_s7 + $0x2] ss:$8 sm:$0x3] (!%p263_p2) }
   0xc   : > { %2413 = vset.pattern.permute.xlu0 (!%p263_p2), %v2446_v5  ;;  %v499_v29 = vrot.slane (!%p263_p2), %v2262_v26, %v2577_v24  ;;  %v503_v30 = vrot.slane (!%p263_p2), %v2262_v26, %v2579_v25  ;;  %v421_v38 = vrot.slane (!%p263_p2), %v416_v31, %v2577_v24  ;;  %v425_v39 = vrot.slane (!%p263_p2), %v416_v31, %v2579_v25  ;;  %v2263_v51 = vld [vmem:[%s3241_s7 + $0x5] ss:$8 sm:$0x3] (!%p263_p2)  ;;  %v2260_v60 = vld [vmem:[%s3241_s7 + $0x1] ss:$8 sm:$0x3] (!%p263_p2) }
   0xd   : > { %s3244_s28 = smov (!%p296_p3, %s2248_s28), 1  ;;  %400 = vperm.xlu0 %2413, %v2532_v1   ;;  %vm466_vm4 = vcmp.lt.s32.totalorder %v2575_v23, 15  ;;  %v475_v49 = vrot.slane %v2261_v40, %v2577_v24  ;;  %v479_v50 = vrot.slane %v2261_v40, %v2579_v25  ;;  %vm522_vm5 = vcmp.lt.s32.totalorder %v2575_v23, 127 }
   0xe   : > { %s2313_s9 = sshll.u32 %s3244_s28, 3  ;;  %v531_v58 = vrot.slane %v2263_v51, %v2577_v24  ;;  %v535_v59 = vrot.slane %v2263_v51, %v2579_v25  ;;  %vm436_vm6 = vcmp.lt.s32.totalorder %v2575_v23, 16  ;;  %v449_v5 = vrot.slane %v2260_v60, %v2579_v25 }
   0xf   : > { %s300_s12 = scalar_lea.vmem %s3234_s0, %s2313_s9  ;;  %vm576_vm7 = vcmp.lt.s32.totalorder %v2575_v23, 112  ;;  %vm552_vm8 = vcmp.lt.s32.totalorder %v2575_v23, 113  ;;  %vm606_vm9 = vcmp.lt.s32.totalorder %v2575_v23, 111 }
  0x10   : > { %v308_v3 = vld [vmem:[%s300_s12] sm:$0xff] }
  0x11   : > { %v311_v4 = vcombine.high %v308_v3, %v308_v3  ;;  %2415 = vset.pattern.permute.xlu0 %v2447_v7 }
  0x13   : > { %2257 = vmatprep.subr.msk.mxu0 %vm316_vm0, %v311_v4  ;;  %v445_v4 = vrot.slane %v2260_v60, %v2577_v24 }
  0x14   : > { %2258 = vmatpush1.msk.msra.mxu0 %vm316_vm0, %v308_v3 }
  0x15   : > { %2259 = vmatmul.mubr.msk.f32.vlgmr.msra.gmra.mrb[0].mxu0 %vm312_vm1, %v309_v6  ;;  %v2265_v6 = vld [vmem:[%s3241_s7 + $0x7] ss:$8 sm:$0x3] }
  0x16   : > { %1243 = vmatprep.mubr.f32.mxu0 %v2444_v0 }
  0x87   : > { %v395_v9 = vpop.permute.xlu0 %394 }
  0x8c   : > { %v401_v11 = vpop.permute.xlu0 %400 }
  0xe8   : > { %v2549_v10 = vpop.f32.mrb[0].mxu0 }
  0xe9   : > { %v2551_v12 = vpop.f32.mrb[1].mxu0  ;;  %v397_v13 = vmul.f32 %v395_v9, %v2549_v10 }
  0xea   : > { %v398_v14 = vmul.f32 %v395_v9, %v2551_v12 }
  0xeb   : > { %v403_v15 = vadd.f32 %v401_v11, %v397_v13 }
  0xec   : > { %v404_v16 = vadd.f32 %v401_v11, %v398_v14 }
  0xed   : > { %v405_v17 = vmax.f32 %v403_v15, 0.0 }
  0xee   : > { %v406_v18 = vmax.f32 %v404_v16, 0.0 }
  0xef   : > { %516 = vst [vmem:[#allocation2 + $0x20] sm:$0xf] %v405_v17  ;;  %432 = vrot.lane.b32.xlu1 %v405_v17, %s2449_s15 }
  0xf0   : > { %517 = vst [vmem:[#allocation2 + $0x28] sm:$0xf] %v406_v18  ;;  %488 = vrot.lane.b32.xlu0 %v406_v18, %s2450_s16 }
  0xf3   : > { %486 = vrot.lane.b32.xlu1 %v405_v17, %s2450_s16 }
  0xf4   : > { %409 = vrot.lane.b32.xlu0 %v406_v18, %s2451_s17 }
  0xf7   : > { %407 = vrot.lane.b32.xlu1 %v405_v17, %s2451_s17 }
  0xf8   : > { %464 = vrot.lane.b32.xlu0 %v406_v18, %s2452_s18 }
  0xfb   : > { %462 = vrot.lane.b32.xlu1 %v405_v17, %s2452_s18 }
  0xfc   : > { %520 = vrot.lane.b32.xlu0 %v406_v18, %s2453_s19 }
  0xff   : > { %518 = vrot.lane.b32.xlu1 %v405_v17, %s2453_s19 }
 0x100   : > { %574 = vrot.lane.b32.xlu0 %v406_v18, %s2454_s20 }
 0x103   : > { %434 = vrot.lane.b32.xlu1 %v406_v18, %s2449_s15 }
 0x104   : > { %550 = vrot.lane.b32.xlu0 %v406_v18, %s2455_s21 }
 0x107   : > { %572 = vrot.lane.b32.xlu1 %v405_v17, %s2454_s20 }
 0x108   : > { %604 = vrot.lane.b32.xlu0 %v406_v18, %s2456_s22  ;;  %v589_v18 = vrot.slane %v2265_v6, %v2579_v25 }
 0x10b   : > { %548 = vrot.lane.b32.xlu1 %v405_v17, %s2455_s21 }
 0x10c   : > { %719 = vperm.xlu0 %2415, %v2532_v1  }
 0x10f   : > { %602 = vrot.lane.b32.xlu1 %v405_v17, %s2456_s22  ;;  %v585_v17 = vrot.slane %v2265_v6, %v2577_v24 }
 0x113   : > { %911 = vperm.xlu1 %2414, %v2532_v1  }
 0x117   : > { %2416 = vset.pattern.permute.xlu1 %v2457_v19  ;;  %v2264_v19 = vld [vmem:[%s3241_s7 + $0x6] ss:$8 sm:$0x3] }
 0x118   : > { %917 = vperm.xlu1 %2416, %v2532_v1   ;;  %v561_v31 = vrot.slane %v2264_v19, %v2577_v24 }
 0x11c   : > { %2417 = vset.pattern.permute.xlu1 %v2458_v20 }
 0x11d   : > { %725 = vperm.xlu1 %2417, %v2532_v1  }
 0x161   : > { %v433_v27 = vpop.permute.xlu1 %432 }
 0x162   : > { %v489_v28 = vpop.permute.xlu0 %488 }
 0x165   : > { %v487_v32 = vpop.permute.xlu1 %486 }
 0x166   : > { %v491_v33 = vsel %vm490_vm2, %v487_v32, %v489_v28  ;;  %v492_v34 = vsel %vm490_vm2, %v489_v28, %v487_v32  ;;  %v410_v35 = vpop.permute.xlu0 %409  ;;  %v565_v32 = vrot.slane %v2264_v19, %v2579_v25  ;;  %v2270_v19 = vld [vmem:[%s3241_s7 + $0x1] ss:$8 sm:$0x3] }
 0x167   : > { %v506_v36 = vmul.f32 %v499_v29, %v492_v34  ;;  %v507_v37 = vmul.f32 %v503_v30, %v491_v33  ;;  %v2266_v33 = vld [vmem:[%s3241_s7 + $0x10] ss:$8 sm:$0x3] }
 0x169   : > { %v510_v41 = vrot.slane %v506_v36, 4  ;;  %v511_v42 = vrot.slane %v507_v37, 4  ;;  %v408_v43 = vpop.permute.xlu1 %407 }
 0x16a   : > { %v414_v44 = vsel %vm413_vm3, %v408_v43, %v410_v35  ;;  %v415_v45 = vsel %vm413_vm3, %v410_v35, %v408_v43  ;;  %v465_v46 = vpop.permute.xlu0 %464 }
 0x16b   : > { %514 = vst [vmem:[#allocation2 + $0x10] sm:$0xf0] %v510_v41  ;;  %515 = vst [vmem:[#allocation2 + $0x18] sm:$0xf0] %v511_v42  ;;  %v428_v47 = vmul.f32 %v421_v38, %v415_v45  ;;  %v429_v48 = vmul.f32 %v425_v39, %v414_v44  ;;  %v615_v41 = vrot.slane %v2266_v33, %v2577_v24 }
 0x16c   : > { %v619_v42 = vrot.slane %v2266_v33, %v2579_v25 }
 0x16d   : > { %430 = vst [vmem:[#allocation2] sm:$0xf] %v428_v47  ;;  %431 = vst [vmem:[#allocation2 + $0x8] sm:$0xf] %v429_v48  ;;  %v463_v52 = vpop.permute.xlu1 %462 }
 0x16e   : > { %v467_v53 = vsel %vm466_vm4, %v463_v52, %v465_v46  ;;  %v468_v54 = vsel %vm466_vm4, %v465_v46, %v463_v52  ;;  %v521_v57 = vpop.permute.xlu0 %520 }
 0x16f   : > { %v482_v55 = vmul.f32 %v475_v49, %v468_v54  ;;  %v483_v56 = vmul.f32 %v479_v50, %v467_v53 }
 0x171   : > { %484 = vst [vmem:[#allocation2 + $0x10] sm:$0xf] %v482_v55  ;;  %485 = vst [vmem:[#allocation2 + $0x18] sm:$0xf] %v483_v56  ;;  %v519_v61 = vpop.permute.xlu1 %518 }
 0x172   : > { %v523_v62 = vsel %vm522_vm5, %v519_v61, %v521_v57  ;;  %v524_v63 = vsel %vm522_vm5, %v521_v57, %v519_v61  ;;  %v575_v9 = vpop.permute.xlu0 %574 }
 0x173   : > { %v538_v2 = vmul.f32 %v531_v58, %v523_v62  ;;  %v539_v3 = vmul.f32 %v535_v59, %v524_v63  ;;  %v626_v62 = vld [vmem:[%s3236_s2] sm:$0xf] }
 0x175   : > { %v542_v7 = vrot.slane %v538_v2, 4  ;;  %v543_v8 = vrot.slane %v539_v3, 4  ;;  %v435_v11 = vpop.permute.xlu1 %434 }
 0x176   : > { %v437_v13 = vsel %vm436_vm6, %v433_v27, %v435_v11  ;;  %v438_v14 = vsel %vm436_vm6, %v435_v11, %v433_v27  ;;  %v551_v28 = vpop.permute.xlu0 %550 }
 0x177   : > { %546 = vst [vmem:[#allocation2 + $0x20] sm:$0xf0] %v542_v7  ;;  %547 = vst [vmem:[#allocation2 + $0x28] sm:$0xf0] %v543_v8  ;;  %v452_v15 = vmul.f32 %v445_v4, %v438_v14  ;;  %v453_v16 = vmul.f32 %v449_v5, %v437_v13  ;;  %v2459_v14 = vmov 3  }
 0x178   : > { %v630_v45 = vld [vmem:[#allocation2 + $0x18] sm:$0xff]  ;;  %v629_v50 = vld [vmem:[#allocation2 + $0x10] sm:$0xff]  ;;  %2418 = vset.pattern.permute.xlu0 %v2459_v14 }
 0x179   : > { %v456_v20 = vrot.slane %v452_v15, 4  ;;  %v457_v21 = vrot.slane %v453_v16, 4  ;;  %v573_v22 = vpop.permute.xlu1 %572  ;;  %v2460_v15 = vmov 4   ;;  %v738_v16 = vld [vmem:[%s3241_s7] ss:$8 sm:$0x3] }
 0x17a   : > { %v577_v26 = vsel %vm576_vm7, %v573_v22, %v575_v9  ;;  %v578_v27 = vsel %vm576_vm7, %v575_v9, %v573_v22  ;;  %v605_v43 = vpop.permute.xlu0 %604  ;;  %2419 = vset.pattern.permute.xlu1 %v2460_v15 }
 0x17b   : > { %460 = vst [vmem:[#allocation2] sm:$0xf0] %v456_v20  ;;  %461 = vst [vmem:[#allocation2 + $0x8] sm:$0xf0] %v457_v21  ;;  %v592_v29 = vmul.f32 %v585_v17, %v577_v26  ;;  %v593_v30 = vmul.f32 %v589_v18, %v578_v27  ;;  %v743_v17 = vrot.slane %v738_v16, %v2577_v24 }
 0x17c   : > { %v747_v18 = vrot.slane %v738_v16, %v2579_v25 }
 0x17d   : > { %v596_v34 = vrot.slane %v592_v29, 4  ;;  %v597_v35 = vrot.slane %v593_v30, 4  ;;  %v549_v36 = vpop.permute.xlu1 %548  ;;  %v765_v29 = vrot.slane %v2270_v19, %v2577_v24  ;;  %v769_v30 = vrot.slane %v2270_v19, %v2579_v25 }
 0x17e   : > { %v553_v37 = vsel %vm552_vm8, %v549_v36, %v551_v28  ;;  %v554_v38 = vsel %vm552_vm8, %v551_v28, %v549_v36  ;;  %v632_v55 = vld [vmem:[#allocation2 + $0x28] sm:$0xff]  ;;  %v631_v57 = vld [vmem:[#allocation2 + $0x20] sm:$0xff] }
 0x17f   : > { %600 = vst [vmem:[#allocation2 + $0x30] sm:$0xf0] %v596_v34  ;;  %601 = vst [vmem:[#allocation2 + $0x38] sm:$0xf0] %v597_v35  ;;  %v568_v39 = vmul.f32 %v561_v31, %v553_v37  ;;  %v569_v40 = vmul.f32 %v565_v32, %v554_v38 }
 0x180   : > { %v2271_v31 = vld [vmem:[%s3241_s7 + $0x2] ss:$8 sm:$0x3] }
 0x181   : > { %570 = vst [vmem:[#allocation2 + $0x30] sm:$0xf] %v568_v39  ;;  %571 = vst [vmem:[#allocation2 + $0x38] sm:$0xf] %v569_v40  ;;  %v603_v44 = vpop.permute.xlu1 %602  ;;  %v787_v38 = vrot.slane %v2271_v31, %v2577_v24  ;;  %v791_v39 = vrot.slane %v2271_v31, %v2579_v25 }
 0x182   : > { %v607_v46 = vsel %vm606_vm9, %v603_v44, %v605_v43  ;;  %v608_v47 = vsel %vm606_vm9, %v605_v43, %v603_v44  ;;  %v628_v48 = vld [vmem:[#allocation2 + $0x8] sm:$0xff]  ;;  %v627_v49 = vld [vmem:[#allocation2] sm:$0xff] }
 0x183   : > { %v622_v51 = vmul.f32 %v615_v41, %v607_v46  ;;  %v623_v52 = vmul.f32 %v619_v42, %v608_v47  ;;  %v2315_v53 = vpack.c.bf16 %v630_v45, %v628_v48  ;;  %v2317_v54 = vpack.c.bf16 %v629_v50, %v627_v49  ;;  %v2272_v40 = vld [vmem:[%s3241_s7 + $0x3] ss:$8 sm:$0x3]  ;;  %v2273_v49 = vld [vmem:[%s3241_s7 + $0x5] ss:$8 sm:$0x3] }
 0x184   : > { %v809_v47 = vrot.slane %v2272_v40, %v2577_v24  ;;  %v813_v48 = vrot.slane %v2272_v40, %v2579_v25 }
 0x185   : > { %624 = vst [vmem:[#allocation2 + $0x40] sm:$0xf] %v622_v51  ;;  %625 = vst [vmem:[#allocation2 + $0x48] sm:$0xf] %v623_v52  ;;  %2316 = vmatprep.subr.bf16.mxu1 %v2315_v53 }
 0x186   : > { %2318 = vmatpush1.bf16.msra.mxu1 %v2317_v54 }
 0x188   : > { %v634_v56 = vld [vmem:[#allocation2 + $0x38] sm:$0xff]  ;;  %v633_v58 = vld [vmem:[#allocation2 + $0x30] sm:$0xff] }
 0x189   : > { %v2319_v59 = vpack.c.bf16 %v634_v56, %v632_v55  ;;  %v2321_v60 = vpack.c.bf16 %v633_v58, %v631_v57  ;;  %v833_v56 = vrot.slane %v2273_v49, %v2577_v24  ;;  %v837_v57 = vrot.slane %v2273_v49, %v2579_v25  ;;  %v2274_v58 = vld [vmem:[%s3241_s7 + $0x6] ss:$8 sm:$0x3] }
 0x18b   : > { %2320 = vmatprep.subr.bf16.mxu1 %v2319_v59  ;;  %v720_v4 = vpop.permute.xlu0 %719 }
 0x18c   : > { %2322 = vmatpush1.bf16.msra.mxu1 %v2321_v60  ;;  %v636_v61 = vld [vmem:[#allocation2 + $0x48] sm:$0xf]  ;;  %v635_v63 = vld [vmem:[#allocation2 + $0x40] sm:$0xf]  ;;  %v722_v5 = vmul.f32 %v720_v4, %v2549_v10  ;;  %v723_v6 = vmul.f32 %v720_v4, %v2551_v12 }
 0x18d   : > { %2267 = vmatprep.subr.msk.mxu1 %vm316_vm0, %v636_v61 }
 0x190   : > { %2268 = vmatpush1.msk.msra.mxu1 %vm316_vm0, %v635_v63 }
 0x191   : > { %2269 = vmatmul.mubr.msk.f32.vlgmr.msra.gmra.mrb[0].mxu1 %vm637_vm10, %v626_v62 }
 0x192   : > { %v2666_v2 = vpop.permute.xlu1 %911  ;;  %2007 = vmatprep.mubr.f32.mxu1 %v2444_v0 }
 0x197   : > { %v2669_v3 = vpop.permute.xlu1 %917 }
 0x19c   : > { %v726_v7 = vpop.permute.xlu1 %725 }
 0x19d   : > { %v728_v8 = vadd.f32 %v726_v7, %v722_v5  ;;  %v729_v9 = vadd.f32 %v726_v7, %v723_v6  ;;  %v855_v5 = vrot.slane %v2274_v58, %v2577_v24  ;;  %v859_v6 = vrot.slane %v2274_v58, %v2579_v25  ;;  %v2275_v7 = vld [vmem:[%s3241_s7 + $0x7] ss:$8 sm:$0x3] }
 0x19e   : > { %v881_v19 = vrot.slane %v2275_v7, %v2579_v25 }
 0x19f   : > { %v2673_v11 = vmax.f32 %v728_v8, 0.0  ;;  %v2675_v13 = vmax.f32 %v729_v9, 0.0 }
 0x1a1   : > { %820 = vst [vmem:[#allocation2 + $0x40] sm:$0xf] %v2673_v11  ;;  %821 = vst [vmem:[#allocation2 + $0x48] sm:$0xf] %v2675_v13  ;;  %734 = vrot.lane.b32.xlu1 %v2675_v13, %s2451_s17  ;;  %732 = vrot.lane.b32.xlu0 %v2673_v11, %s2451_s17 }
 0x1a5   : > { %756 = vrot.lane.b32.xlu1 %v2675_v13, %s2449_s15  ;;  %754 = vrot.lane.b32.xlu0 %v2673_v11, %s2449_s15 }
 0x1a9   : > { %778 = vrot.lane.b32.xlu1 %v2675_v13, %s2452_s18  ;;  %776 = vrot.lane.b32.xlu0 %v2673_v11, %s2452_s18 }
 0x1ad   : > { %800 = vrot.lane.b32.xlu1 %v2675_v13, %s2450_s16  ;;  %798 = vrot.lane.b32.xlu0 %v2673_v11, %s2450_s16 }
 0x1b1   : > { %824 = vrot.lane.b32.xlu1 %v2675_v13, %s2453_s19  ;;  %822 = vrot.lane.b32.xlu0 %v2673_v11, %s2453_s19 }
 0x1b5   : > { %846 = vrot.lane.b32.xlu1 %v2675_v13, %s2455_s21  ;;  %844 = vrot.lane.b32.xlu0 %v2673_v11, %s2455_s21 }
 0x1b9   : > { %868 = vrot.lane.b32.xlu1 %v2675_v13, %s2454_s20  ;;  %866 = vrot.lane.b32.xlu0 %v2673_v11, %s2454_s20 }
 0x213   : > { %v735_v20 = vpop.permute.xlu1 %734  ;;  %v733_v21 = vpop.permute.xlu0 %732 }
 0x214   : > { %v736_v22 = vsel %vm413_vm3, %v733_v21, %v735_v20  ;;  %v737_v26 = vsel %vm413_vm3, %v735_v20, %v733_v21 }
 0x215   : > { %v750_v27 = vmul.f32 %v743_v17, %v737_v26  ;;  %v751_v28 = vmul.f32 %v747_v18, %v736_v22  ;;  %v877_v18 = vrot.slane %v2275_v7, %v2577_v24 }
 0x217   : > { %752 = vst [vmem:[#allocation2] sm:$0xf] %v750_v27  ;;  %753 = vst [vmem:[#allocation2 + $0x8] sm:$0xf] %v751_v28  ;;  %v757_v32 = vpop.permute.xlu1 %756  ;;  %v755_v33 = vpop.permute.xlu0 %754 }
 0x218   : > { %v758_v34 = vsel %vm436_vm6, %v755_v33, %v757_v32  ;;  %v759_v35 = vsel %vm436_vm6, %v757_v32, %v755_v33 }
 0x219   : > { %v772_v36 = vmul.f32 %v765_v29, %v759_v35  ;;  %v773_v37 = vmul.f32 %v769_v30, %v758_v34 }
 0x21b   : > { %774 = vst [vmem:[#allocation2 + $0x10] sm:$0xf] %v772_v36  ;;  %775 = vst [vmem:[#allocation2 + $0x18] sm:$0xf] %v773_v37  ;;  %v779_v41 = vpop.permute.xlu1 %778  ;;  %v777_v42 = vpop.permute.xlu0 %776 }
 0x21c   : > { %v780_v43 = vsel %vm466_vm4, %v777_v42, %v779_v41  ;;  %v781_v44 = vsel %vm466_vm4, %v779_v41, %v777_v42 }
 0x21d   : > { %v794_v45 = vmul.f32 %v787_v38, %v781_v44  ;;  %v795_v46 = vmul.f32 %v791_v39, %v780_v43  ;;  %v2463_v39 = vmov 5   ;;  %v2277_v43 = vld [vmem:[%s3241_s7 + $0x1] ss:$8 sm:$0x3] }
 0x21e   : > { %v967_v49 = vrot.slane %v2277_v43, %v2579_v25 }
 0x21f   : > { %796 = vst [vmem:[#allocation2 + $0x20] sm:$0xf] %v794_v45  ;;  %797 = vst [vmem:[#allocation2 + $0x28] sm:$0xf] %v795_v46  ;;  %v801_v50 = vpop.permute.xlu1 %800  ;;  %v799_v51 = vpop.permute.xlu0 %798 }
 0x220   : > { %v802_v52 = vsel %vm490_vm2, %v799_v51, %v801_v50  ;;  %v803_v53 = vsel %vm490_vm2, %v801_v50, %v799_v51  ;;  %v2278_v51 = vld [vmem:[%s3241_s7 + $0x2] ss:$8 sm:$0x3] }
 0x221   : > { %v816_v54 = vmul.f32 %v809_v47, %v803_v53  ;;  %v817_v55 = vmul.f32 %v813_v48, %v802_v52  ;;  %v963_v48 = vrot.slane %v2277_v43, %v2577_v24 }
 0x223   : > { %818 = vst [vmem:[#allocation2 + $0x30] sm:$0xf] %v816_v54  ;;  %819 = vst [vmem:[#allocation2 + $0x38] sm:$0xf] %v817_v55  ;;  %v825_v59 = vpop.permute.xlu1 %824  ;;  %v823_v60 = vpop.permute.xlu0 %822 }
 0x224   : > { %v826_v61 = vsel %vm522_vm5, %v823_v60, %v825_v59  ;;  %v827_v62 = vsel %vm522_vm5, %v825_v59, %v823_v60  ;;  %v991_v59 = vrot.slane %v2278_v51, %v2577_v24  ;;  %v995_v60 = vrot.slane %v2278_v51, %v2579_v25 }
 0x225   : > { %v840_v63 = vmul.f32 %v833_v56, %v826_v61  ;;  %v841_v4 = vmul.f32 %v837_v57, %v827_v62  ;;  %v2279_v62 = vld [vmem:[%s3241_s7 + $0x3] ss:$8 sm:$0x3] }
 0x227   : > { %842 = vst [vmem:[#allocation2 + $0x50] sm:$0xf] %v840_v63  ;;  %843 = vst [vmem:[#allocation2 + $0x58] sm:$0xf] %v841_v4  ;;  %v847_v8 = vpop.permute.xlu1 %846  ;;  %v845_v9 = vpop.permute.xlu0 %844 }
 0x228   : > { %v848_v14 = vsel %vm552_vm8, %v845_v9, %v847_v8  ;;  %v849_v15 = vsel %vm552_vm8, %v847_v8, %v845_v9 }
 0x229   : > { %v862_v16 = vmul.f32 %v855_v5, %v848_v14  ;;  %v863_v17 = vmul.f32 %v859_v6, %v849_v15  ;;  %v1019_v14 = vrot.slane %v2279_v62, %v2577_v24  ;;  %v1023_v15 = vrot.slane %v2279_v62, %v2579_v25 }
 0x22b   : > { %864 = vst [vmem:[#allocation2 + $0x60] sm:$0xf] %v862_v16  ;;  %865 = vst [vmem:[#allocation2 + $0x68] sm:$0xf] %v863_v17  ;;  %v869_v20 = vpop.permute.xlu1 %868  ;;  %v867_v21 = vpop.permute.xlu0 %866 }
 0x22c   : > { %v870_v22 = vsel %vm576_vm7, %v867_v21, %v869_v20  ;;  %v871_v26 = vsel %vm576_vm7, %v869_v20, %v867_v21  ;;  %v2280_v17 = vld [vmem:[%s3241_s7 + $0x5] ss:$8 sm:$0x3] }
 0x22d   : > { %v884_v27 = vmul.f32 %v877_v18, %v870_v22  ;;  %v885_v28 = vmul.f32 %v881_v19, %v871_v26 }
 0x22f   : > { %886 = vst [vmem:[#allocation2 + $0x70] sm:$0xf] %v884_v27  ;;  %887 = vst [vmem:[#allocation2 + $0x78] sm:$0xf] %v885_v28  ;;  %v1055_v28 = vrot.slane %v2280_v17, %v2577_v24 }
 0x264   : > { %v2770_v29 = vpop.f32.mrb[0].mxu1 }
 0x265   : > { %v914_v30 = vmul.f32 %v2666_v2, %v2770_v29  ;;  %v2774_v31 = vpop.f32.mrb[1].mxu1 }
 0x266   : > { %v915_v32 = vmul.f32 %v2666_v2, %v2774_v31  ;;  %v2461_v2 = vmov 14  }
 0x267   : > { %v920_v33 = vadd.f32 %v2669_v3, %v914_v30  ;;  %v1059_v30 = vrot.slane %v2280_v17, %v2579_v25 }
 0x268   : > { %v921_v34 = vadd.f32 %v2669_v3, %v915_v32  ;;  %v2462_v3 = vmov 13   ;;  %v2281_v32 = vld [vmem:[%s3241_s7 + $0x6] ss:$8 sm:$0x3] }
 0x269   : > { %v922_v35 = vmax.f32 %v920_v33, 0.0 }
 0x26a   : > { %v923_v36 = vmax.f32 %v921_v34, 0.0 }
 0x26b   : > { %924 = vrot.lane.b32.xlu0 %v922_v35, %s2451_s17  ;;  %v1038_v37 = vrot.slane %v922_v35, 4 }
 0x26c   : > { %926 = vrot.lane.b32.xlu1 %v923_v36, %s2451_s17  ;;  %v1039_v38 = vrot.slane %v923_v36, 4 }
 0x26d   : > { %1042 = vst [vmem:[#allocation2 + $0x40] sm:$0xf0] %v1038_v37 }
 0x26e   : > { %1043 = vst [vmem:[#allocation2 + $0x48] sm:$0xf0] %v1039_v38 }
 0x26f   : > { %952 = vrot.lane.b32.xlu0 %v922_v35, %s2449_s15 }
 0x270   : > { %954 = vrot.lane.b32.xlu1 %v923_v36, %s2449_s15 }
 0x273   : > { %980 = vrot.lane.b32.xlu0 %v922_v35, %s2452_s18 }
 0x274   : > { %982 = vrot.lane.b32.xlu1 %v923_v36, %s2452_s18 }
 0x277   : > { %1008 = vrot.lane.b32.xlu0 %v922_v35, %s2450_s16 }
 0x278   : > { %1010 = vrot.lane.b32.xlu1 %v923_v36, %s2450_s16 }
 0x27b   : > { %1044 = vrot.lane.b32.xlu0 %v922_v35, %s2453_s19 }
 0x27c   : > { %1046 = vrot.lane.b32.xlu1 %v923_v36, %s2453_s19 }
 0x27f   : > { %1072 = vrot.lane.b32.xlu0 %v922_v35, %s2455_s21 }
 0x280   : > { %1074 = vrot.lane.b32.xlu1 %v923_v36, %s2455_s21 }
 0x283   : > { %1100 = vrot.lane.b32.xlu0 %v922_v35, %s2454_s20 }
 0x284   : > { %1102 = vrot.lane.b32.xlu1 %v923_v36, %s2454_s20 }
 0x287   : > { %1128 = vrot.lane.b32.xlu0 %v922_v35, %s2456_s22 }
 0x288   : > { %1130 = vrot.lane.b32.xlu1 %v923_v36, %s2456_s22 }
 0x28b   : > { %888 = vrot.lane.b32.xlu0 %v2673_v11, %s2456_s22  ;;  %v2464_v11 = vmov 15  }
 0x28c   : > { %890 = vrot.lane.b32.xlu1 %v2675_v13, %s2456_s22  ;;  %v930_v13 = vld [vmem:[%s3241_s7] ss:$8 sm:$0x3] }
 0x28d   : > { %v935_v40 = vrot.slane %v930_v13, %v2577_v24  ;;  %v939_v41 = vrot.slane %v930_v13, %v2579_v25 }
 0x28f   : > { %1251 = vperm.xlu0 %2418, %v2532_v1  }
 0x290   : > { %1467 = vperm.xlu1 %2419, %v2532_v1  }
 0x293   : > { %2421 = vset.pattern.permute.xlu0 %v2461_v2 }
 0x294   : > { %1473 = vperm.xlu0 %2421, %v2532_v1   ;;  %2420 = vset.pattern.permute.xlu1 %v2462_v3 }
 0x295   : > { %1257 = vperm.xlu1 %2420, %v2532_v1  }
 0x299   : > { %2422 = vset.pattern.permute.xlu1 %v2463_v39  ;;  %v1083_v39 = vrot.slane %v2281_v32, %v2577_v24 }
 0x29a   : > { %1689 = vperm.xlu1 %2422, %v2532_v1  }
 0x29e   : > { %2423 = vset.pattern.permute.xlu1 %v2464_v11  ;;  %v1087_v11 = vrot.slane %v2281_v32, %v2579_v25 }
 0x29f   : > { %1695 = vperm.xlu1 %2423, %v2532_v1  }
 0x2dd   : > { %v925_v42 = vpop.permute.xlu0 %924 }
 0x2de   : > { %v927_v44 = vpop.permute.xlu1 %926 }
 0x2df   : > { %v928_v45 = vsel %vm413_vm3, %v925_v42, %v927_v44  ;;  %v929_v1 = vsel %vm413_vm3, %v927_v44, %v925_v42 }
 0x2e0   : > { %v942_v46 = vmul.f32 %v935_v40, %v929_v1  ;;  %v943_v47 = vmul.f32 %v939_v41, %v928_v45  ;;  %v2282_v1 = vld [vmem:[%s3241_s7 + $0x7] ss:$8 sm:$0x3] }
 0x2e1   : > { %v953_v50 = vpop.permute.xlu0 %952 }
 0x2e2   : > { %v946_v52 = vrot.slane %v942_v46, 4  ;;  %v947_v53 = vrot.slane %v943_v47, 4  ;;  %v955_v54 = vpop.permute.xlu1 %954 }
 0x2e3   : > { %v956_v55 = vsel %vm436_vm6, %v953_v50, %v955_v54  ;;  %v957_v56 = vsel %vm436_vm6, %v955_v54, %v953_v50  ;;  %v1115_v54 = vrot.slane %v2282_v1, %v2579_v25 }
 0x2e4   : > { %950 = vst [vmem:[#allocation2] sm:$0xf0] %v946_v52  ;;  %951 = vst [vmem:[#allocation2 + $0x8] sm:$0xf0] %v947_v53  ;;  %v970_v57 = vmul.f32 %v963_v48, %v957_v56  ;;  %v971_v58 = vmul.f32 %v967_v49, %v956_v55  ;;  %v1111_v53 = vrot.slane %v2282_v1, %v2577_v24 }
 0x2e5   : > { %v981_v61 = vpop.permute.xlu0 %980  ;;  %v2283_v55 = vld [vmem:[%s3241_s7 + $0x10] ss:$8 sm:$0x3] }
 0x2e6   : > { %v974_v63 = vrot.slane %v970_v57, 4  ;;  %v975_v4 = vrot.slane %v971_v58, 4  ;;  %v983_v5 = vpop.permute.xlu1 %982 }
 0x2e7   : > { %v984_v6 = vsel %vm466_vm4, %v981_v61, %v983_v5  ;;  %v985_v7 = vsel %vm466_vm4, %v983_v5, %v981_v61  ;;  %v1143_v5 = vrot.slane %v2283_v55, %v2579_v25 }
 0x2e8   : > { %978 = vst [vmem:[#allocation2 + $0x10] sm:$0xf0] %v974_v63  ;;  %979 = vst [vmem:[#allocation2 + $0x18] sm:$0xf0] %v975_v4  ;;  %v998_v8 = vmul.f32 %v991_v59, %v985_v7  ;;  %v999_v9 = vmul.f32 %v995_v60, %v984_v6  ;;  %v1139_v4 = vrot.slane %v2283_v55, %v2577_v24 }
 0x2e9   : > { %v1009_v16 = vpop.permute.xlu0 %1008 }
 0x2ea   : > { %v1002_v18 = vrot.slane %v998_v8, 4  ;;  %v1003_v19 = vrot.slane %v999_v9, 4  ;;  %v1011_v20 = vpop.permute.xlu1 %1010 }
 0x2eb   : > { %v1012_v21 = vsel %vm490_vm2, %v1009_v16, %v1011_v20  ;;  %v1013_v22 = vsel %vm490_vm2, %v1011_v20, %v1009_v16  ;;  %v1158_v37 = vld [vmem:[#allocation2 + $0x8] sm:$0xff]  ;;  %v1157_v13 = vld [vmem:[#allocation2] sm:$0xff]  ;;  %v2276_v16 = vld [vmem:[%s3241_s7 + $0x10] ss:$8 sm:$0x3] }
 0x2ec   : > { %1006 = vst [vmem:[#allocation2 + $0x20] sm:$0xf0] %v1002_v18  ;;  %1007 = vst [vmem:[#allocation2 + $0x28] sm:$0xf0] %v1003_v19  ;;  %v1026_v26 = vmul.f32 %v1019_v14, %v1013_v22  ;;  %v1027_v27 = vmul.f32 %v1023_v15, %v1012_v21  ;;  %v1165_v21 = vld [vmem:[#allocation2 + $0x40] sm:$0xff] }
 0x2ed   : > { %v1045_v33 = vpop.permute.xlu0 %1044 }
 0x2ee   : > { %v1030_v34 = vrot.slane %v1026_v26, 4  ;;  %v1031_v35 = vrot.slane %v1027_v27, 4  ;;  %v1047_v36 = vpop.permute.xlu1 %1046  ;;  %v899_v27 = vrot.slane %v2276_v16, %v2577_v24 }
 0x2ef   : > { %v1048_v38 = vsel %vm522_vm5, %v1045_v33, %v1047_v36  ;;  %v1049_v2 = vsel %vm522_vm5, %v1047_v36, %v1045_v33  ;;  %v1160_v3 = vld [vmem:[#allocation2 + $0x18] sm:$0xff]  ;;  %v1159_v40 = vld [vmem:[#allocation2 + $0x10] sm:$0xff] }
 0x2f0   : > { %1034 = vst [vmem:[#allocation2 + $0x30] sm:$0xf0] %v1030_v34  ;;  %1035 = vst [vmem:[#allocation2 + $0x38] sm:$0xf0] %v1031_v35  ;;  %v1062_v41 = vmul.f32 %v1055_v28, %v1048_v38  ;;  %v1063_v42 = vmul.f32 %v1059_v30, %v1049_v2  ;;  %v2323_v43 = vpack.c.bf16 %v1160_v3, %v1158_v37  ;;  %v1166_v30 = vld [vmem:[#allocation2 + $0x48] sm:$0xff] }
 0x2f1   : > { %v2325_v44 = vpack.c.bf16 %v1159_v40, %v1157_v13  ;;  %v1073_v45 = vpop.permute.xlu0 %1072  ;;  %v903_v28 = vrot.slane %v2276_v16, %v2579_v25  ;;  %v2285_v16 = vld [vmem:[%s3241_s7 + $0x1] ss:$8 sm:$0x3] }
 0x2f2   : > { %v1066_v46 = vrot.slane %v1062_v41, 4  ;;  %v1067_v47 = vrot.slane %v1063_v42, 4  ;;  %2324 = vmatprep.subr.bf16.mxu0 %v2323_v43  ;;  %v1075_v48 = vpop.permute.xlu1 %1074 }
 0x2f3   : > { %v1076_v49 = vsel %vm552_vm8, %v1073_v45, %v1075_v48  ;;  %v1077_v50 = vsel %vm552_vm8, %v1075_v48, %v1073_v45  ;;  %2326 = vmatpush1.bf16.msra.mxu0 %v2325_v44  ;;  %v1162_v60 = vld [vmem:[#allocation2 + $0x28] sm:$0xff]  ;;  %v1161_v6 = vld [vmem:[#allocation2 + $0x20] sm:$0xff] }
 0x2f4   : > { %1070 = vst [vmem:[#allocation2 + $0x50] sm:$0xf0] %v1066_v46  ;;  %1071 = vst [vmem:[#allocation2 + $0x58] sm:$0xf0] %v1067_v47  ;;  %v1090_v51 = vmul.f32 %v1083_v39, %v1076_v49  ;;  %v1091_v52 = vmul.f32 %v1087_v11, %v1077_v50  ;;  %v1156_v49 = vld [vmem:[%s3237_s3] sm:$0xf] }
 0x2f5   : > { %v1101_v56 = vpop.permute.xlu0 %1100 }
 0x2f6   : > { %v1094_v57 = vrot.slane %v1090_v51, 4  ;;  %v1095_v58 = vrot.slane %v1091_v52, 4  ;;  %v1103_v59 = vpop.permute.xlu1 %1102 }
 0x2f7   : > { %v1104_v61 = vsel %vm576_vm7, %v1101_v56, %v1103_v59  ;;  %v1105_v62 = vsel %vm576_vm7, %v1103_v59, %v1101_v56  ;;  %v1164_v63 = vld [vmem:[#allocation2 + $0x38] sm:$0xff]  ;;  %v1163_v7 = vld [vmem:[#allocation2 + $0x30] sm:$0xff] }
 0x2f8   : > { %1098 = vst [vmem:[#allocation2 + $0x60] sm:$0xf0] %v1094_v57  ;;  %1099 = vst [vmem:[#allocation2 + $0x68] sm:$0xf0] %v1095_v58  ;;  %v1118_v8 = vmul.f32 %v1111_v53, %v1104_v61  ;;  %v1119_v9 = vmul.f32 %v1115_v54, %v1105_v62  ;;  %v2327_v14 = vpack.c.bf16 %v1164_v63, %v1162_v60 }
 0x2f9   : > { %v2329_v15 = vpack.c.bf16 %v1163_v7, %v1161_v6  ;;  %v1129_v17 = vpop.permute.xlu0 %1128 }
 0x2fa   : > { %v1122_v18 = vrot.slane %v1118_v8, 4  ;;  %v1123_v19 = vrot.slane %v1119_v9, 4  ;;  %2328 = vmatprep.subr.bf16.mxu0 %v2327_v14  ;;  %v1131_v20 = vpop.permute.xlu1 %1130  ;;  %v2465_v9 = vmov 7   ;;  %v2466_v14 = vmov 9  }
 0x2fb   : > { %v1132_v22 = vsel %vm606_vm9, %v1129_v17, %v1131_v20  ;;  %v1133_v26 = vsel %vm606_vm9, %v1131_v20, %v1129_v17  ;;  %2330 = vmatpush1.bf16.msra.mxu0 %v2329_v15  ;;  %v1168_v32 = vld [vmem:[#allocation2 + $0x58] sm:$0xff]  ;;  %v1167_v33 = vld [vmem:[#allocation2 + $0x50] sm:$0xff]  ;;  %2424 = vset.pattern.permute.xlu0 %v2465_v9  ;;  %v1297_v17 = vrot.slane %v2285_v16, %v2577_v24 }
 0x2fc   : > { %1126 = vst [vmem:[#allocation2 + $0x70] sm:$0xf0] %v1122_v18  ;;  %1127 = vst [vmem:[#allocation2 + $0x78] sm:$0xf0] %v1123_v19  ;;  %v1146_v34 = vmul.f32 %v1139_v4, %v1132_v22  ;;  %v1147_v35 = vmul.f32 %v1143_v5, %v1133_v26  ;;  %v2331_v36 = vpack.c.bf16 %v1168_v32, %v1166_v30  ;;  %2425 = vset.pattern.permute.xlu1 %v2466_v14 }
 0x2fd   : > { %v2333_v37 = vpack.c.bf16 %v1167_v33, %v1165_v21  ;;  %v889_v38 = vpop.permute.xlu0 %888  ;;  %v1301_v18 = vrot.slane %v2285_v16, %v2579_v25 }
 0x2fe   : > { %v1150_v2 = vrot.slane %v1146_v34, 4  ;;  %v1151_v3 = vrot.slane %v1147_v35, 4  ;;  %v891_v39 = vpop.permute.xlu1 %890  ;;  %2332 = vmatprep.subr.bf16.mxu0 %v2331_v36 }
 0x2ff   : > { %v892_v11 = vsel %vm606_vm9, %v889_v38, %v891_v39  ;;  %v893_v13 = vsel %vm606_vm9, %v891_v39, %v889_v38  ;;  %2334 = vmatpush1.bf16.msra.mxu0 %v2333_v37  ;;  %v1170_v42 = vld [vmem:[#allocation2 + $0x68] sm:$0xff]  ;;  %v1169_v44 = vld [vmem:[#allocation2 + $0x60] sm:$0xff] }
 0x300   : > { %1154 = vst [vmem:[#allocation2 + $0x80] sm:$0xf0] %v1150_v2  ;;  %1155 = vst [vmem:[#allocation2 + $0x88] sm:$0xf0] %v1151_v3  ;;  %v906_v40 = vmul.f32 %v899_v27, %v892_v11  ;;  %v907_v41 = vmul.f32 %v903_v28, %v893_v13 }
 0x301   : > { %v1270_v28 = vld [vmem:[%s3241_s7] ss:$8 sm:$0x3]  ;;  %v2286_v13 = vld [vmem:[%s3241_s7 + $0x2] ss:$8 sm:$0x3] }
 0x302   : > { %908 = vst [vmem:[#allocation2 + $0x80] sm:$0xf] %v906_v40  ;;  %909 = vst [vmem:[#allocation2 + $0x88] sm:$0xf] %v907_v41  ;;  %v1275_v35 = vrot.slane %v1270_v28, %v2577_v24  ;;  %v1279_v36 = vrot.slane %v1270_v28, %v2579_v25 }
 0x303   : > { %v1172_v43 = vld [vmem:[#allocation2 + $0x78] sm:$0xff]  ;;  %v1171_v45 = vld [vmem:[#allocation2 + $0x70] sm:$0xff] }
 0x304   : > { %v2335_v1 = vpack.c.bf16 %v1172_v43, %v1170_v42  ;;  %v2337_v46 = vpack.c.bf16 %v1171_v45, %v1169_v44  ;;  %v1325_v42 = vrot.slane %v2286_v13, %v2577_v24  ;;  %v1329_v43 = vrot.slane %v2286_v13, %v2579_v25 }
 0x306   : > { %2336 = vmatprep.subr.bf16.mxu0 %v2335_v1 }
 0x307   : > { %2338 = vmatpush1.bf16.msra.mxu0 %v2337_v46 }
 0x309   : > { %v1174_v47 = vld [vmem:[#allocation2 + $0x88] sm:$0xff]  ;;  %v1173_v48 = vld [vmem:[#allocation2 + $0x80] sm:$0xff] }
 0x30a   : > { %1195 = vmatprep.subr.mxu0 %v1174_v47 }
 0x30b   : > { %1196 = vmatpush1.msra.mxu0 %v1173_v48 }
 0x30c   : > { %2284 = vmatmul.mubr.msk.f32.vlgmr.msra.gmra.mrb[2].mxu0 %vm1175_vm11, %v1156_v49  ;;  %v2287_v49 = vld [vmem:[%s3241_s7 + $0x3] ss:$8 sm:$0x3] }
 0x30d   : > { %2176 = vmatprep.mubr.f32.mxu0 %v2444_v0 }
 0x30e   : > { %v1252_v50 = vpop.permute.xlu0 %1251 }
 0x30f   : > { %v1468_v51 = vpop.permute.xlu1 %1467  ;;  %v1254_v54 = vmul.f32 %v1252_v50, %v2549_v10  ;;  %v1255_v55 = vmul.f32 %v1252_v50, %v2551_v12 }
 0x310   : > { %v1470_v52 = vmul.f32 %v1468_v51, %v2770_v29  ;;  %v1471_v53 = vmul.f32 %v1468_v51, %v2774_v31 }
 0x313   : > { %v1474_v56 = vpop.permute.xlu0 %1473 }
 0x314   : > { %v1476_v57 = vadd.f32 %v1474_v56, %v1470_v52  ;;  %v1477_v58 = vadd.f32 %v1474_v56, %v1471_v53  ;;  %v1258_v59 = vpop.permute.xlu1 %1257  ;;  %v1347_v52 = vrot.slane %v2287_v49, %v2577_v24  ;;  %v1351_v53 = vrot.slane %v2287_v49, %v2579_v25 }
 0x315   : > { %v1260_v60 = vadd.f32 %v1258_v59, %v1254_v54  ;;  %v1261_v61 = vadd.f32 %v1258_v59, %v1255_v55 }
 0x316   : > { %v1478_v62 = vmax.f32 %v1476_v57, 0.0  ;;  %v1479_v63 = vmax.f32 %v1477_v58, 0.0 }
 0x317   : > { %v1262_v4 = vmax.f32 %v1260_v60, 0.0  ;;  %v1263_v5 = vmax.f32 %v1261_v61, 0.0  ;;  %v2288_v60 = vld [vmem:[%s3241_s7 + $0x5] ss:$8 sm:$0x3] }
 0x318   : > { %v1582_v6 = vrot.slane %v1478_v62, 4  ;;  %v1583_v7 = vrot.slane %v1479_v63, 4  ;;  %v1486_v61 = vld [vmem:[%s3241_s7] ss:$8 sm:$0x3]  ;;  %v1381_v9 = vrot.slane %v2288_v60, %v2579_v25 }
 0x319   : > { %1364 = vst [vmem:[#allocation2 + $0x60] sm:$0xf] %v1262_v4  ;;  %1365 = vst [vmem:[#allocation2 + $0x68] sm:$0xf] %v1263_v5  ;;  %1288 = vrot.lane.b32.xlu1 %v1263_v5, %s2449_s15  ;;  %1286 = vrot.lane.b32.xlu0 %v1262_v4, %s2449_s15  ;;  %v2927_v8 = vpop.permute.xlu1 %1689  ;;  %v1491_v14 = vrot.slane %v1486_v61, %v2577_v24  ;;  %v1495_v16 = vrot.slane %v1486_v61, %v2579_v25 }
 0x31a   : > { %1586 = vst [vmem:[#allocation2 + $0x60] sm:$0xf0] %v1582_v6  ;;  %1587 = vst [vmem:[#allocation2 + $0x68] sm:$0xf0] %v1583_v7  ;;  %v1377_v7 = vrot.slane %v2288_v60, %v2577_v24 }
 0x31b   : > { %v2293_v6 = vld [vmem:[%s3241_s7 + $0x2] ss:$8 sm:$0x3] }
 0x31d   : > { %1266 = vrot.lane.b32.xlu1 %v1263_v5, %s2451_s17  ;;  %1480 = vrot.lane.b32.xlu0 %v1478_v62, %s2451_s17 }
 0x31e   : > { %v2929_v15 = vpop.permute.xlu1 %1695 }
 0x321   : > { %1316 = vrot.lane.b32.xlu1 %v1263_v5, %s2452_s18  ;;  %1264 = vrot.lane.b32.xlu0 %v1262_v4, %s2451_s17 }
 0x325   : > { %1338 = vrot.lane.b32.xlu1 %v1263_v5, %s2450_s16  ;;  %1530 = vrot.lane.b32.xlu0 %v1478_v62, %s2452_s18 }
 0x329   : > { %1368 = vrot.lane.b32.xlu1 %v1263_v5, %s2453_s19  ;;  %1314 = vrot.lane.b32.xlu0 %v1262_v4, %s2452_s18 }
 0x32d   : > { %1396 = vrot.lane.b32.xlu1 %v1263_v5, %s2455_s21  ;;  %1508 = vrot.lane.b32.xlu0 %v1478_v62, %s2449_s15 }
 0x331   : > { %1418 = vrot.lane.b32.xlu1 %v1263_v5, %s2454_s20  ;;  %1336 = vrot.lane.b32.xlu0 %v1262_v4, %s2450_s16 }
 0x335   : > { %1446 = vrot.lane.b32.xlu1 %v1263_v5, %s2456_s22  ;;  %1558 = vrot.lane.b32.xlu0 %v1478_v62, %s2450_s16 }
 0x339   : > { %1482 = vrot.lane.b32.xlu1 %v1479_v63, %s2451_s17  ;;  %1366 = vrot.lane.b32.xlu0 %v1262_v4, %s2453_s19 }
 0x33d   : > { %1532 = vrot.lane.b32.xlu1 %v1479_v63, %s2452_s18  ;;  %1610 = vrot.lane.b32.xlu0 %v1478_v62, %s2455_s21 }
 0x341   : > { %1510 = vrot.lane.b32.xlu1 %v1479_v63, %s2449_s15  ;;  %1394 = vrot.lane.b32.xlu0 %v1262_v4, %s2455_s21 }
 0x345   : > { %1560 = vrot.lane.b32.xlu1 %v1479_v63, %s2450_s16  ;;  %1588 = vrot.lane.b32.xlu0 %v1478_v62, %s2453_s19 }
 0x349   : > { %1612 = vrot.lane.b32.xlu1 %v1479_v63, %s2455_s21  ;;  %1416 = vrot.lane.b32.xlu0 %v1262_v4, %s2454_s20 }
 0x34d   : > { %1590 = vrot.lane.b32.xlu1 %v1479_v63, %s2453_s19  ;;  %1638 = vrot.lane.b32.xlu0 %v1478_v62, %s2454_s20 }
 0x351   : > { %1640 = vrot.lane.b32.xlu1 %v1479_v63, %s2454_s20  ;;  %1660 = vrot.lane.b32.xlu0 %v1478_v62, %s2456_s22 }
 0x355   : > { %1662 = vrot.lane.b32.xlu1 %v1479_v63, %s2456_s22  ;;  %1444 = vrot.lane.b32.xlu0 %v1262_v4, %s2456_s22 }
 0x38b   : > { %v1287_v19 = vpop.permute.xlu0 %1286  ;;  %v1289_v20 = vpop.permute.xlu1 %1288 }
 0x38c   : > { %v1290_v21 = vsel %vm436_vm6, %v1287_v19, %v1289_v20  ;;  %v1291_v22 = vsel %vm436_vm6, %v1289_v20, %v1287_v19  ;;  %v1541_v19 = vrot.slane %v2293_v6, %v2577_v24  ;;  %v1545_v20 = vrot.slane %v2293_v6, %v2579_v25 }
 0x38d   : > { %v1304_v26 = vmul.f32 %v1297_v17, %v1291_v22  ;;  %v1305_v27 = vmul.f32 %v1301_v18, %v1290_v21 }
 0x38f   : > { %v1308_v30 = vrot.slane %v1304_v26, 4  ;;  %v1309_v32 = vrot.slane %v1305_v27, 4  ;;  %v1481_v33 = vpop.permute.xlu0 %1480  ;;  %v1267_v34 = vpop.permute.xlu1 %1266 }
 0x391   : > { %1312 = vst [vmem:[#allocation2 + $0x10] sm:$0xf0] %v1308_v30  ;;  %1313 = vst [vmem:[#allocation2 + $0x18] sm:$0xf0] %v1309_v32 }
 0x393   : > { %v1265_v37 = vpop.permute.xlu0 %1264  ;;  %v1317_v38 = vpop.permute.xlu1 %1316 }
 0x394   : > { %v1268_v2 = vsel %vm413_vm3, %v1265_v37, %v1267_v34  ;;  %v1269_v3 = vsel %vm413_vm3, %v1267_v34, %v1265_v37 }
 0x395   : > { %v1282_v39 = vmul.f32 %v1275_v35, %v1269_v3  ;;  %v1283_v11 = vmul.f32 %v1279_v36, %v1268_v2  ;;  %v2289_v35 = vld [vmem:[%s3241_s7 + $0x6] ss:$8 sm:$0x3]  ;;  %v2292_v36 = vld [vmem:[%s3241_s7 + $0x1] ss:$8 sm:$0x3] }
 0x397   : > { %1284 = vst [vmem:[#allocation2] sm:$0xf] %v1282_v39  ;;  %1285 = vst [vmem:[#allocation2 + $0x8] sm:$0xf] %v1283_v11  ;;  %v1531_v40 = vpop.permute.xlu0 %1530  ;;  %v1339_v41 = vpop.permute.xlu1 %1338 }
 0x39b   : > { %v1315_v44 = vpop.permute.xlu0 %1314  ;;  %v1369_v45 = vpop.permute.xlu1 %1368 }
 0x39c   : > { %v1318_v1 = vsel %vm466_vm4, %v1315_v44, %v1317_v38  ;;  %v1319_v46 = vsel %vm466_vm4, %v1317_v38, %v1315_v44 }
 0x39d   : > { %v1332_v47 = vmul.f32 %v1325_v42, %v1319_v46  ;;  %v1333_v48 = vmul.f32 %v1329_v43, %v1318_v1  ;;  %v1409_v42 = vrot.slane %v2289_v35, %v2579_v25  ;;  %v2294_v43 = vld [vmem:[%s3241_s7 + $0x3] ss:$8 sm:$0x3]  ;;  %v1519_v1 = vrot.slane %v2292_v36, %v2577_v24 }
 0x39e   : > { %v1523_v46 = vrot.slane %v2292_v36, %v2579_v25 }
 0x39f   : > { %1334 = vst [vmem:[#allocation2 + $0x30] sm:$0xf] %v1332_v47  ;;  %1335 = vst [vmem:[#allocation2 + $0x38] sm:$0xf] %v1333_v48  ;;  %v2961_v50 = vpop.permute.xlu0 %1508  ;;  %v2963_v51 = vpop.permute.xlu1 %1396 }
 0x3a3   : > { %v1337_v54 = vpop.permute.xlu0 %1336  ;;  %v2967_v55 = vpop.permute.xlu1 %1418 }
 0x3a4   : > { %v1340_v56 = vsel %vm490_vm2, %v1337_v54, %v1339_v41  ;;  %v1341_v57 = vsel %vm490_vm2, %v1339_v41, %v1337_v54  ;;  %v1405_v41 = vrot.slane %v2289_v35, %v2577_v24 }
 0x3a5   : > { %v1354_v58 = vmul.f32 %v1347_v52, %v1341_v57  ;;  %v1355_v59 = vmul.f32 %v1351_v53, %v1340_v56  ;;  %v1569_v52 = vrot.slane %v2294_v43, %v2577_v24  ;;  %v1573_v53 = vrot.slane %v2294_v43, %v2579_v25 }
 0x3a7   : > { %v1358_v62 = vrot.slane %v1354_v58, 4  ;;  %v1359_v63 = vrot.slane %v1355_v59, 4  ;;  %v2979_v4 = vpop.permute.xlu0 %1558  ;;  %v2981_v5 = vpop.permute.xlu1 %1446 }
 0x3a9   : > { %1362 = vst [vmem:[#allocation2 + $0x40] sm:$0xf0] %v1358_v62  ;;  %1363 = vst [vmem:[#allocation2 + $0x48] sm:$0xf0] %v1359_v63 }
 0x3aa   : > { %v2290_v63 = vld [vmem:[%s3241_s7 + $0x7] ss:$8 sm:$0x3] }
 0x3ab   : > { %v1367_v17 = vpop.permute.xlu0 %1366  ;;  %v1483_v18 = vpop.permute.xlu1 %1482 }
 0x3ac   : > { %v1370_v21 = vsel %vm522_vm5, %v1367_v17, %v1369_v45  ;;  %v1371_v22 = vsel %vm522_vm5, %v1369_v45, %v1367_v17  ;;  %v1484_v26 = vsel %vm413_vm3, %v1481_v33, %v1483_v18  ;;  %v1485_v27 = vsel %vm413_vm3, %v1483_v18, %v1481_v33  ;;  %v2295_v17 = vld [vmem:[%s3241_s7 + $0x5] ss:$8 sm:$0x3] }
 0x3ad   : > { %v1384_v28 = vmul.f32 %v1377_v7, %v1370_v21  ;;  %v1385_v30 = vmul.f32 %v1381_v9, %v1371_v22  ;;  %v1498_v32 = vmul.f32 %v1491_v14, %v1485_v27  ;;  %v1499_v34 = vmul.f32 %v1495_v16, %v1484_v26 }
 0x3ae   : > { %v1427_v14 = vrot.slane %v2290_v63, %v2577_v24  ;;  %v1431_v16 = vrot.slane %v2290_v63, %v2579_v25  ;;  %v1603_v27 = vrot.slane %v2295_v17, %v2579_v25 }
 0x3af   : > { %v1388_v37 = vrot.slane %v1384_v28, 4  ;;  %v1389_v38 = vrot.slane %v1385_v30, 4  ;;  %v1502_v2 = vrot.slane %v1498_v32, 4  ;;  %v1503_v3 = vrot.slane %v1499_v34, 4  ;;  %v1611_v39 = vpop.permute.xlu0 %1610  ;;  %v1533_v11 = vpop.permute.xlu1 %1532 }
 0x3b0   : > { %v1534_v33 = vsel %vm466_vm4, %v1531_v40, %v1533_v11  ;;  %v1535_v13 = vsel %vm466_vm4, %v1533_v11, %v1531_v40 }
 0x3b1   : > { %1392 = vst [vmem:[#allocation2 + $0x70] sm:$0xf0] %v1388_v37  ;;  %1393 = vst [vmem:[#allocation2 + $0x78] sm:$0xf0] %v1389_v38  ;;  %v1548_v44 = vmul.f32 %v1541_v19, %v1535_v13  ;;  %v1549_v45 = vmul.f32 %v1545_v20, %v1534_v33 }
 0x3b2   : > { %1506 = vst [vmem:[#allocation2] sm:$0xf0] %v1502_v2  ;;  %1507 = vst [vmem:[#allocation2 + $0x8] sm:$0xf0] %v1503_v3 }
 0x3b3   : > { %v1552_v47 = vrot.slane %v1548_v44, 4  ;;  %v1553_v40 = vrot.slane %v1549_v45, 4  ;;  %v1395_v48 = vpop.permute.xlu0 %1394  ;;  %v1511_v49 = vpop.permute.xlu1 %1510  ;;  %v2297_v2 = vld [vmem:[%s3241_s7 + $0x7] ss:$8 sm:$0x3] }
 0x3b4   : > { %v1398_v54 = vsel %vm552_vm8, %v1395_v48, %v2963_v51  ;;  %v1399_v56 = vsel %vm552_vm8, %v2963_v51, %v1395_v48  ;;  %v1512_v57 = vsel %vm436_vm6, %v2961_v50, %v1511_v49  ;;  %v1513_v58 = vsel %vm436_vm6, %v1511_v49, %v2961_v50  ;;  %v2296_v51 = vld [vmem:[%s3241_s7 + $0x6] ss:$8 sm:$0x3] }
 0x3b5   : > { %1556 = vst [vmem:[#allocation2 + $0x30] sm:$0xf0] %v1552_v47  ;;  %1557 = vst [vmem:[#allocation2 + $0x38] sm:$0xf0] %v1553_v40  ;;  %v1412_v59 = vmul.f32 %v1405_v41, %v1398_v54  ;;  %v1413_v60 = vmul.f32 %v1409_v42, %v1399_v56  ;;  %v1526_v61 = vmul.f32 %v1519_v1, %v1513_v58 }
 0x3b6   : > { %v1527_v62 = vmul.f32 %v1523_v46, %v1512_v57  ;;  %v1621_v20 = vrot.slane %v2296_v51, %v2577_v24  ;;  %v1625_v21 = vrot.slane %v2296_v51, %v2579_v25  ;;  %v1649_v45 = vrot.slane %v2297_v2, %v2577_v24  ;;  %v2291_v46 = vld [vmem:[%s3241_s7 + $0x10] ss:$8 sm:$0x3] }
 0x3b7   : > { %1414 = vst [vmem:[#allocation2 + $0x90] sm:$0xf] %v1412_v59  ;;  %1415 = vst [vmem:[#allocation2 + $0x98] sm:$0xf] %v1413_v60  ;;  %v1589_v6 = vpop.permute.xlu0 %1588  ;;  %v1561_v50 = vpop.permute.xlu1 %1560  ;;  %v1653_v1 = vrot.slane %v2297_v2, %v2579_v25  ;;  %v1459_v54 = vrot.slane %v2291_v46, %v2579_v25 }
 0x3b8   : > { %1528 = vst [vmem:[#allocation2 + $0x20] sm:$0xf] %v1526_v61  ;;  %1529 = vst [vmem:[#allocation2 + $0x28] sm:$0xf] %v1527_v62  ;;  %v1562_v7 = vsel %vm490_vm2, %v2979_v4, %v1561_v50  ;;  %v1563_v9 = vsel %vm490_vm2, %v1561_v50, %v2979_v4  ;;  %v1599_v4 = vrot.slane %v2295_v17, %v2577_v24 }
 0x3b9   : > { %v1576_v18 = vmul.f32 %v1569_v52, %v1563_v9  ;;  %v1577_v19 = vmul.f32 %v1573_v53, %v1562_v7  ;;  %v2298_v47 = vld [vmem:[%s3241_s7 + $0x10] ss:$8 sm:$0x3]  ;;  %v1455_v53 = vrot.slane %v2291_v46, %v2577_v24  ;;  %v2299_v2 = vld [vmem:[%s3241_s7 + $0x1] ss:$8 sm:$0x3] }
 0x3ba   : > { %v1671_v58 = vrot.slane %v2298_v47, %v2577_v24  ;;  %v1675_v59 = vrot.slane %v2298_v47, %v2579_v25 }
 0x3bb   : > { %1578 = vst [vmem:[#allocation2 + $0x50] sm:$0xf] %v1576_v18  ;;  %1579 = vst [vmem:[#allocation2 + $0x58] sm:$0xf] %v1577_v19  ;;  %v1417_v22 = vpop.permute.xlu0 %1416  ;;  %v1613_v26 = vpop.permute.xlu1 %1612 }
 0x3bc   : > { %v1420_v28 = vsel %vm576_vm7, %v1417_v22, %v2967_v55  ;;  %v1421_v30 = vsel %vm576_vm7, %v2967_v55, %v1417_v22  ;;  %v1614_v32 = vsel %vm552_vm8, %v1611_v39, %v1613_v26  ;;  %v1615_v34 = vsel %vm552_vm8, %v1613_v26, %v1611_v39 }
 0x3bd   : > { %v1434_v35 = vmul.f32 %v1427_v14, %v1420_v28  ;;  %v1435_v36 = vmul.f32 %v1431_v16, %v1421_v30  ;;  %v1628_v37 = vmul.f32 %v1621_v20, %v1614_v32  ;;  %v1629_v38 = vmul.f32 %v1625_v21, %v1615_v34 }
 0x3be   : > { %v2469_v28 = vmov 16   ;;  %v2470_v30 = vmov 8   ;;  %v2471_v32 = vmov 19   ;;  %v2472_v34 = vmov 18  }
 0x3bf   : > { %v1438_v3 = vrot.slane %v1434_v35, 4  ;;  %v1439_v11 = vrot.slane %v1435_v36, 4  ;;  %v1632_v33 = vrot.slane %v1628_v37, 4  ;;  %v1633_v13 = vrot.slane %v1629_v38, 4  ;;  %v1639_v41 = vpop.permute.xlu0 %1638  ;;  %v1591_v55 = vpop.permute.xlu1 %1590 }
 0x3c0   : > { %v1592_v42 = vsel %vm522_vm5, %v1589_v6, %v1591_v55  ;;  %v1593_v39 = vsel %vm522_vm5, %v1591_v55, %v1589_v6  ;;  %v1708_v35 = vld [vmem:[%s3241_s7] ss:$8 sm:$0x3]  ;;  %v1735_v55 = vrot.slane %v2299_v2, %v2577_v24 }
 0x3c1   : > { %1442 = vst [vmem:[#allocation2 + $0xa0] sm:$0xf0] %v1438_v3  ;;  %1443 = vst [vmem:[#allocation2 + $0xa8] sm:$0xf0] %v1439_v11  ;;  %v1606_v43 = vmul.f32 %v1599_v4, %v1592_v42  ;;  %v1607_v44 = vmul.f32 %v1603_v27, %v1593_v39  ;;  %v2468_v27 = vmov 6   ;;  %v1713_v36 = vrot.slane %v1708_v35, %v2577_v24 }
 0x3c2   : > { %1636 = vst [vmem:[#allocation2 + $0x90] sm:$0xf0] %v1632_v33  ;;  %1637 = vst [vmem:[#allocation2 + $0x98] sm:$0xf0] %v1633_v13  ;;  %v1717_v37 = vrot.slane %v1708_v35, %v2579_v25  ;;  %v1739_v42 = vrot.slane %v2299_v2, %v2579_v25 }
 0x3c3   : > { %1608 = vst [vmem:[#allocation2 + $0x80] sm:$0xf] %v1606_v43  ;;  %1609 = vst [vmem:[#allocation2 + $0x88] sm:$0xf] %v1607_v44  ;;  %v1661_v40 = vpop.permute.xlu0 %1660  ;;  %v1641_v48 = vpop.permute.xlu1 %1640 }
 0x3c4   : > { %v1642_v49 = vsel %vm576_vm7, %v1639_v41, %v1641_v48  ;;  %v1643_v52 = vsel %vm576_vm7, %v1641_v48, %v1639_v41  ;;  %v2301_v43 = vld [vmem:[%s3241_s7 + $0x3] ss:$8 sm:$0x3] }
 0x3c5   : > { %v1656_v56 = vmul.f32 %v1649_v45, %v1642_v49  ;;  %v1657_v57 = vmul.f32 %v1653_v1, %v1643_v52  ;;  %v1789_v48 = vrot.slane %v2301_v43, %v2579_v25  ;;  %v2300_v52 = vld [vmem:[%s3241_s7 + $0x2] ss:$8 sm:$0x3] }
 0x3c7   : > { %1658 = vst [vmem:[#allocation2 + $0xb0] sm:$0xf] %v1656_v56  ;;  %1659 = vst [vmem:[#allocation2 + $0xb8] sm:$0xf] %v1657_v57  ;;  %v1445_v60 = vpop.permute.xlu0 %1444  ;;  %v1663_v61 = vpop.permute.xlu1 %1662 }
 0x3c8   : > { %v1448_v62 = vsel %vm606_vm9, %v1445_v60, %v2981_v5  ;;  %v1449_v63 = vsel %vm606_vm9, %v2981_v5, %v1445_v60  ;;  %v1664_v51 = vsel %vm606_vm9, %v1661_v40, %v1663_v61  ;;  %v1665_v6 = vsel %vm606_vm9, %v1663_v61, %v1661_v40 }
 0x3c9   : > { %v1462_v50 = vmul.f32 %v1455_v53, %v1448_v62  ;;  %v1463_v7 = vmul.f32 %v1459_v54, %v1449_v63  ;;  %v1678_v9 = vmul.f32 %v1671_v58, %v1664_v51  ;;  %v1679_v14 = vmul.f32 %v1675_v59, %v1665_v6  ;;  %v1906_v63 = vld [vmem:[#allocation2 + $0x8] sm:$0xff]  ;;  %v1905_v51 = vld [vmem:[#allocation2] sm:$0xff] }
 0x3ca   : > { %v1785_v40 = vrot.slane %v2301_v43, %v2577_v24  ;;  %v1763_v61 = vrot.slane %v2300_v52, %v2577_v24  ;;  %v1767_v62 = vrot.slane %v2300_v52, %v2579_v25 }
 0x3cb   : > { %1464 = vst [vmem:[#allocation2 + $0xc0] sm:$0xf] %v1462_v50  ;;  %1465 = vst [vmem:[#allocation2 + $0xc8] sm:$0xf] %v1463_v7  ;;  %v1682_v16 = vrot.slane %v1678_v9, 4  ;;  %v1683_v17 = vrot.slane %v1679_v14, 4 }
 0x3cc   : > { %v2302_v9 = vld [vmem:[%s3241_s7 + $0x5] ss:$8 sm:$0x3] }
 0x3cd   : > { %1686 = vst [vmem:[#allocation2 + $0xc0] sm:$0xf0] %v1682_v16  ;;  %1687 = vst [vmem:[#allocation2 + $0xc8] sm:$0xf0] %v1683_v17 }
 0x3df   : > { %v3095_v18 = vpop.f32.mrb[2].mxu0 }
 0x3e0   : > { %v1692_v5 = vmul.f32 %v2927_v8, %v3095_v18  ;;  %v3099_v19 = vpop.f32.mrb[3].mxu0 }
 0x3e1   : > { %v1693_v20 = vmul.f32 %v2927_v8, %v3099_v19  ;;  %v3124_v8 = vld [vmem:[%s3240_s6] sm:$0xff] }
 0x3e2   : > { %v1698_v21 = vadd.f32 %v2929_v15, %v1692_v5 }
 0x3e3   : > { %v1699_v22 = vadd.f32 %v2929_v15, %v1693_v20  ;;  %v2467_v15 = vmov 17  }
 0x3e4   : > { %v1700_v26 = vmax.f32 %v1698_v21, 0.0 }
 0x3e5   : > { %v1701_v4 = vmax.f32 %v1699_v22, 0.0 }
 0x3e6   : > { %1802 = vst [vmem:[#allocation2 + $0x70] sm:$0xf] %v1700_v26  ;;  %1702 = vrot.lane.b32.xlu0 %v1700_v26, %s2451_s17 }
 0x3e7   : > { %1803 = vst [vmem:[#allocation2 + $0x78] sm:$0xf] %v1701_v4  ;;  %1704 = vrot.lane.b32.xlu1 %v1701_v4, %s2451_s17 }
 0x3ea   : > { %1724 = vrot.lane.b32.xlu0 %v1700_v26, %s2449_s15 }
 0x3eb   : > { %1726 = vrot.lane.b32.xlu1 %v1701_v4, %s2449_s15 }
 0x3ee   : > { %1774 = vrot.lane.b32.xlu0 %v1700_v26, %s2450_s16 }
 0x3ef   : > { %1776 = vrot.lane.b32.xlu1 %v1701_v4, %s2450_s16 }
 0x3f2   : > { %1752 = vrot.lane.b32.xlu0 %v1700_v26, %s2452_s18 }
 0x3f3   : > { %1754 = vrot.lane.b32.xlu1 %v1701_v4, %s2452_s18 }
 0x3f6   : > { %1804 = vrot.lane.b32.xlu0 %v1700_v26, %s2453_s19 }
 0x3f7   : > { %1806 = vrot.lane.b32.xlu1 %v1701_v4, %s2453_s19 }
 0x3fa   : > { %1854 = vrot.lane.b32.xlu0 %v1700_v26, %s2454_s20 }
 0x3fb   : > { %1856 = vrot.lane.b32.xlu1 %v1701_v4, %s2454_s20 }
 0x3fe   : > { %1832 = vrot.lane.b32.xlu0 %v1700_v26, %s2455_s21 }
 0x3ff   : > { %1834 = vrot.lane.b32.xlu1 %v1701_v4, %s2455_s21  ;;  %s2314_s21 = sshll.u32 %s3244_s28, 5 }
 0x400   : > { %s305_s24 = scalar_lea.vmem %s3242_s8, %s2314_s21 }
 0x402   : > { %1882 = vrot.lane.b32.xlu0 %v1700_v26, %s2456_s22 }
 0x403   : > { %1884 = vrot.lane.b32.xlu1 %v1701_v4, %s2456_s22 }
 0x406   : > { %2031 = vperm.xlu0 %2424, %v3124_v8  }
 0x407   : > { %2069 = vperm.xlu1 %2425, %v3124_v8  }
 0x40a   : > { %2427 = vset.pattern.permute.xlu0 %v2467_v15  ;;  %v1815_v15 = vrot.slane %v2302_v9, %v2577_v24 }
 0x40b   : > { %2037 = vperm.xlu0 %2427, %v3124_v8   ;;  %2426 = vset.pattern.permute.xlu1 %v2468_v27  ;;  %v1819_v27 = vrot.slane %v2302_v9, %v2579_v25 }
 0x40c   : > { %2015 = vperm.xlu1 %2426, %v3124_v8  }
 0x40f   : > { %2430 = vset.pattern.permute.xlu0 %v2469_v28  ;;  %v2304_v28 = vld [vmem:[%s3241_s7 + $0x7] ss:$8 sm:$0x3] }
 0x410   : > { %2021 = vperm.xlu0 %2430, %v3124_v8   ;;  %2428 = vset.pattern.permute.xlu1 %v2470_v30  ;;  %v1869_v2 = vrot.slane %v2304_v28, %v2579_v25 }
 0x411   : > { %2053 = vperm.xlu1 %2428, %v3124_v8  }
 0x415   : > { %2429 = vset.pattern.permute.xlu1 %v2471_v32 }
 0x416   : > { %2075 = vperm.xlu1 %2429, %v3124_v8  }
 0x41a   : > { %2431 = vset.pattern.permute.xlu1 %v2472_v34  ;;  %v1912_v34 = vld [vmem:[#allocation2 + $0x38] sm:$0xff] }
 0x41b   : > { %2059 = vperm.xlu1 %2431, %v3124_v8  }
 0x458   : > { %v1703_v38 = vpop.permute.xlu0 %1702 }
 0x459   : > { %v1705_v3 = vpop.permute.xlu1 %1704 }
 0x45a   : > { %v1706_v11 = vsel %vm413_vm3, %v1703_v38, %v1705_v3  ;;  %v1707_v33 = vsel %vm413_vm3, %v1705_v3, %v1703_v38  ;;  %v1865_v38 = vrot.slane %v2304_v28, %v2577_v24 }
 0x45b   : > { %v1720_v13 = vmul.f32 %v1713_v36, %v1707_v33  ;;  %v1721_v41 = vmul.f32 %v1717_v37, %v1706_v11  ;;  %v1911_v11 = vld [vmem:[#allocation2 + $0x30] sm:$0xff] }
 0x45c   : > { %v1725_v39 = vpop.permute.xlu0 %1724 }
 0x45d   : > { %1722 = vst [vmem:[#allocation2 + $0x10] sm:$0xf] %v1720_v13  ;;  %1723 = vst [vmem:[#allocation2 + $0x18] sm:$0xf] %v1721_v41  ;;  %v1727_v44 = vpop.permute.xlu1 %1726 }
 0x45e   : > { %v1728_v45 = vsel %vm436_vm6, %v1725_v39, %v1727_v44  ;;  %v1729_v1 = vsel %vm436_vm6, %v1727_v44, %v1725_v39  ;;  %v2303_v39 = vld [vmem:[%s3241_s7 + $0x6] ss:$8 sm:$0x3] }
 0x45f   : > { %v1742_v46 = vmul.f32 %v1735_v55, %v1729_v1  ;;  %v1743_v47 = vmul.f32 %v1739_v42, %v1728_v45 }
 0x460   : > { %v1775_v49 = vpop.permute.xlu0 %1774 }
 0x461   : > { %v1746_v53 = vrot.slane %v1742_v46, 4  ;;  %v1747_v54 = vrot.slane %v1743_v47, 4  ;;  %v1777_v56 = vpop.permute.xlu1 %1776 }
 0x462   : > { %v1778_v57 = vsel %vm490_vm2, %v1775_v49, %v1777_v56  ;;  %v1779_v58 = vsel %vm490_vm2, %v1777_v56, %v1775_v49  ;;  %v1847_v49 = vrot.slane %v2303_v39, %v2579_v25 }
 0x463   : > { %1750 = vst [vmem:[#allocation2 + $0x20] sm:$0xf0] %v1746_v53  ;;  %1751 = vst [vmem:[#allocation2 + $0x28] sm:$0xf0] %v1747_v54  ;;  %v1792_v59 = vmul.f32 %v1785_v40, %v1779_v58  ;;  %v1793_v60 = vmul.f32 %v1789_v48, %v1778_v57  ;;  %v1843_v48 = vrot.slane %v2303_v39, %v2577_v24  ;;  %v1920_v54 = vld [vmem:[#allocation2 + $0x78] sm:$0xff] }
 0x464   : > { %v1753_v6 = vpop.permute.xlu0 %1752  ;;  %v1908_v50 = vld [vmem:[#allocation2 + $0x18] sm:$0xff]  ;;  %v1907_v7 = vld [vmem:[#allocation2 + $0x10] sm:$0xff] }
 0x465   : > { %v1796_v14 = vrot.slane %v1792_v59, 4  ;;  %v1797_v16 = vrot.slane %v1793_v60, 4  ;;  %v1755_v17 = vpop.permute.xlu1 %1754  ;;  %v2339_v5 = vpack.c.bf16 %v1908_v50, %v1906_v63  ;;  %v2341_v20 = vpack.c.bf16 %v1907_v7, %v1905_v51  ;;  %v2305_v53 = vld [vmem:[%s3241_s7 + $0x10] ss:$8 sm:$0x3] }
 0x466   : > { %v1756_v21 = vsel %vm466_vm4, %v1753_v6, %v1755_v17  ;;  %v1757_v22 = vsel %vm466_vm4, %v1755_v17, %v1753_v6  ;;  %v1918_v6 = vld [vmem:[#allocation2 + $0x68] sm:$0xff]  ;;  %v1893_v17 = vrot.slane %v2305_v53, %v2577_v24 }
 0x467   : > { %1800 = vst [vmem:[#allocation2 + $0x50] sm:$0xf0] %v1796_v14  ;;  %1801 = vst [vmem:[#allocation2 + $0x58] sm:$0xf0] %v1797_v16  ;;  %v1770_v26 = vmul.f32 %v1763_v61, %v1757_v22  ;;  %v1771_v4 = vmul.f32 %v1767_v62, %v1756_v21  ;;  %2340 = vmatprep.subr.bf16.mxu1 %v2339_v5  ;;  %v2351_v9 = vpack.c.bf16 %v1920_v54, %v1918_v6 }
 0x468   : > { %v1805_v30 = vpop.permute.xlu0 %1804  ;;  %2342 = vmatpush1.bf16.msra.mxu1 %v2341_v20  ;;  %v1897_v5 = vrot.slane %v2305_v53, %v2579_v25  ;;  %v1919_v20 = vld [vmem:[#allocation2 + $0x70] sm:$0xff] }
 0x469   : > { %1772 = vst [vmem:[#allocation2 + $0x40] sm:$0xf] %v1770_v26  ;;  %1773 = vst [vmem:[#allocation2 + $0x48] sm:$0xf] %v1771_v4  ;;  %v1807_v32 = vpop.permute.xlu1 %1806  ;;  %v1917_v26 = vld [vmem:[#allocation2 + $0x60] sm:$0xff] }
 0x46a   : > { %v1808_v35 = vsel %vm522_vm5, %v1805_v30, %v1807_v32  ;;  %v1809_v36 = vsel %vm522_vm5, %v1807_v32, %v1805_v30  ;;  %v1910_v37 = vld [vmem:[#allocation2 + $0x28] sm:$0xff]  ;;  %v1909_v3 = vld [vmem:[#allocation2 + $0x20] sm:$0xff]  ;;  %v1924_v30 = vld [vmem:[#allocation2 + $0x98] sm:$0xff] }
 0x46b   : > { %v1822_v33 = vmul.f32 %v1815_v15, %v1808_v35  ;;  %v1823_v13 = vmul.f32 %v1819_v27, %v1809_v36  ;;  %v2343_v41 = vpack.c.bf16 %v1912_v34, %v1910_v37  ;;  %v2345_v55 = vpack.c.bf16 %v1911_v11, %v1909_v3  ;;  %v1923_v35 = vld [vmem:[#allocation2 + $0x90] sm:$0xff] }
 0x46c   : > { %v1855_v42 = vpop.permute.xlu0 %1854  ;;  %v2353_v27 = vpack.c.bf16 %v1919_v20, %v1917_v26 }
 0x46d   : > { %v1826_v43 = vrot.slane %v1822_v33, 4  ;;  %v1827_v44 = vrot.slane %v1823_v13, 4  ;;  %2344 = vmatprep.subr.bf16.mxu1 %v2343_v41  ;;  %v1857_v45 = vpop.permute.xlu1 %1856  ;;  %v1930_v33 = vld [vmem:[#allocation2 + $0xc8] sm:$0xff]  ;;  %v1929_v13 = vld [vmem:[#allocation2 + $0xc0] sm:$0xff] }
 0x46e   : > { %v1858_v1 = vsel %vm576_vm7, %v1855_v42, %v1857_v45  ;;  %v1859_v46 = vsel %vm576_vm7, %v1857_v45, %v1855_v42  ;;  %2346 = vmatpush1.bf16.msra.mxu1 %v2345_v55  ;;  %v1916_v52 = vld [vmem:[#allocation2 + $0x58] sm:$0xff]  ;;  %v1915_v59 = vld [vmem:[#allocation2 + $0x50] sm:$0xff] }
 0x46f   : > { %1830 = vst [vmem:[#allocation2 + $0x80] sm:$0xf0] %v1826_v43  ;;  %1831 = vst [vmem:[#allocation2 + $0x88] sm:$0xf0] %v1827_v44  ;;  %v1872_v47 = vmul.f32 %v1865_v38, %v1858_v1  ;;  %v1873_v40 = vmul.f32 %v1869_v2, %v1859_v46  ;;  %v1904_v43 = vld [vmem:[%s3238_s4] sm:$0xf] }
 0x470   : > { %v1833_v56 = vpop.permute.xlu0 %1832  ;;  %v1914_v57 = vld [vmem:[#allocation2 + $0x48] sm:$0xff]  ;;  %v1913_v58 = vld [vmem:[#allocation2 + $0x40] sm:$0xff] }
 0x471   : > { %v1876_v60 = vrot.slane %v1872_v47, 4  ;;  %v1877_v61 = vrot.slane %v1873_v40, 4  ;;  %v1835_v62 = vpop.permute.xlu1 %1834  ;;  %v2347_v63 = vpack.c.bf16 %v1916_v52, %v1914_v57  ;;  %v2349_v51 = vpack.c.bf16 %v1915_v59, %v1913_v58 }
 0x472   : > { %v1836_v50 = vsel %vm552_vm8, %v1833_v56, %v1835_v62  ;;  %v1837_v7 = vsel %vm552_vm8, %v1835_v62, %v1833_v56 }
 0x473   : > { %1880 = vst [vmem:[#allocation2 + $0xb0] sm:$0xf0] %v1876_v60  ;;  %1881 = vst [vmem:[#allocation2 + $0xb8] sm:$0xf0] %v1877_v61  ;;  %v1850_v14 = vmul.f32 %v1843_v48, %v1836_v50  ;;  %v1851_v16 = vmul.f32 %v1847_v49, %v1837_v7  ;;  %2348 = vmatprep.subr.bf16.mxu1 %v2347_v63 }
 0x474   : > { %v1883_v21 = vpop.permute.xlu0 %1882  ;;  %2350 = vmatpush1.bf16.msra.mxu1 %v2349_v51 }
 0x475   : > { %1852 = vst [vmem:[#allocation2 + $0xa0] sm:$0xf] %v1850_v14  ;;  %1853 = vst [vmem:[#allocation2 + $0xa8] sm:$0xf] %v1851_v16  ;;  %v1885_v22 = vpop.permute.xlu1 %1884  ;;  %2352 = vmatprep.subr.bf16.mxu1 %v2351_v9  ;;  %v307_v14 = vld [vmem:[%s3240_s6 + $0x8] sm:$0xff]  ;;  %v2474_v16 = vmov 20  }
 0x476   : > { %v1886_v4 = vsel %vm606_vm9, %v1883_v21, %v1885_v22  ;;  %v1887_v15 = vsel %vm606_vm9, %v1885_v22, %v1883_v21  ;;  %v1922_v28 = vld [vmem:[#allocation2 + $0x88] sm:$0xff]  ;;  %v1921_v34 = vld [vmem:[#allocation2 + $0x80] sm:$0xff]  ;;  %2432 = vset.pattern.permute.xlu1 %v2474_v16  ;;  %2433 = vset.pattern.permute.xlu0 %v2474_v16 }
 0x477   : > { %v1900_v24 = vmul.f32 %v1893_v17, %v1886_v4  ;;  %v1901_v32 = vmul.f32 %v1897_v5, %v1887_v15  ;;  %v2355_v25 = vpack.c.bf16 %v1924_v30, %v1922_v28  ;;  %v2357_v36 = vpack.c.bf16 %v1923_v35, %v1921_v34  ;;  %2097 = vperm.xlu1 %2432, %v3124_v8   ;;  %v2091_v34 = vld [vmem:[%s3239_s5 + $0x8] sm:$0xff] }
 0x478   : > { %2354 = vmatpush1.bf16.msra.mxu1 %v2353_v27  ;;  %2102 = vperm.xlu0 %2433, %v307_v14  }
 0x479   : > { %1902 = vst [vmem:[#allocation2 + $0xd0] sm:$0xf] %v1900_v24  ;;  %1903 = vst [vmem:[#allocation2 + $0xd8] sm:$0xf] %v1901_v32  ;;  %2356 = vmatprep.subr.bf16.mxu1 %v2355_v25  ;;  %v2090_v25 = vld [vmem:[%s3239_s5] sm:$0xff] }
 0x47a   : > { %v1928_v37 = vld [vmem:[#allocation2 + $0xb8] sm:$0xff]  ;;  %v1927_v3 = vld [vmem:[#allocation2 + $0xb0] sm:$0xff] }
 0x47c   : > { %2358 = vmatpush1.bf16.msra.mxu1 %v2357_v36  ;;  %v1926_v38 = vld [vmem:[#allocation2 + $0xa8] sm:$0xff]  ;;  %v1925_v2 = vld [vmem:[#allocation2 + $0xa0] sm:$0xff] }
 0x47d   : > { %v2359_v23 = vpack.c.bf16 %v1928_v37, %v1926_v38  ;;  %v2361_v11 = vpack.c.bf16 %v1927_v3, %v1925_v2 }
 0x47f   : > { %2360 = vmatprep.subr.bf16.mxu1 %v2359_v23 }
 0x480   : > { %2362 = vmatpush1.bf16.msra.mxu1 %v2361_v11  ;;  %v1932_v41 = vld [vmem:[#allocation2 + $0xd8] sm:$0xf]  ;;  %v1931_v55 = vld [vmem:[#allocation2 + $0xd0] sm:$0xf] }
 0x481   : > { %v2363_v42 = vpack.c.bf16 %v1932_v41, %v1930_v33  ;;  %v2366_v39 = vpack.c.bf16 %v1931_v55, %v1929_v13 }
 0x483   : > { %2365 = vmatprep.subr.msk.bf16.mxu1 %vm2364_vm13, %v2363_v42 }
 0x484   : > { %2368 = vmatpush1.bf16.msk.msra.mxu1 %vm2364_vm13, %v2366_v39 }
 0x485   : > { %v2032_v44 = vpop.permute.xlu0 %2031 }
 0x486   : > { %v2070_v45 = vpop.permute.xlu1 %2069  ;;  %v2034_v1 = vmul.f32 %v2032_v44, %v2770_v29  ;;  %v2035_v46 = vmul.f32 %v2032_v44, %v2774_v31 }
 0x487   : > { %2308 = vmatmul.mubr.msk.f32.vlgmr.msra.gmra.mrb[2].mxu1 %vm1933_vm14, %v1904_v43 }
 0x48a   : > { %v2038_v47 = vpop.permute.xlu0 %2037 }
 0x48b   : > { %v2040_v40 = vadd.f32 %v2038_v47, %v2034_v1  ;;  %v2041_v48 = vadd.f32 %v2038_v47, %v2035_v46  ;;  %v2016_v49 = vpop.permute.xlu1 %2015 }
 0x48c   : > { %v2018_v54 = vmul.f32 %v2016_v49, %v2549_v10  ;;  %v2019_v56 = vmul.f32 %v2016_v49, %v2551_v12 }
 0x48d   : > { %v2042_v52 = vmax.f32 %v2040_v40, 0.0  ;;  %v2043_v53 = vmax.f32 %v2041_v48, 0.0 }
 0x48f   : > { %v2046_v57 = vrot.slane %v2042_v52, 4  ;;  %v2047_v58 = vrot.slane %v2043_v53, 4  ;;  %v2022_v59 = vpop.permute.xlu0 %2021 }
 0x490   : > { %v2024_v60 = vadd.f32 %v2022_v59, %v2018_v54  ;;  %v2025_v61 = vadd.f32 %v2022_v59, %v2019_v56  ;;  %v2054_v29 = vpop.permute.xlu1 %2053 }
 0x491   : > { %2050 = vst [vmem:[#allocation2] sm:$0xf0] %v2046_v57  ;;  %2051 = vst [vmem:[#allocation2 + $0x8] sm:$0xf0] %v2047_v58  ;;  %v2056_v51 = vmul.f32 %v2054_v29, %v3095_v18  ;;  %v2057_v6 = vmul.f32 %v2054_v29, %v3099_v19 }
 0x492   : > { %v2026_v62 = vmax.f32 %v2024_v60, 0.0  ;;  %v2027_v31 = vmax.f32 %v2025_v61, 0.0 }
 0x494   : > { %2028 = vst [vmem:[#allocation2] sm:$0xf] %v2026_v62  ;;  %2029 = vst [vmem:[#allocation2 + $0x8] sm:$0xf] %v2027_v31 }
 0x495   : > { %v2076_v63 = vpop.permute.xlu1 %2075 }
 0x49a   : > { %v2060_v10 = vpop.permute.xlu1 %2059 }
 0x49b   : > { %v2062_v50 = vadd.f32 %v2060_v10, %v2056_v51  ;;  %v2063_v12 = vadd.f32 %v2060_v10, %v2057_v6  ;;  %v2093_v28 = vld [vmem:[#allocation2 + $0x8] sm:$0xff]  ;;  %v2092_v32 = vld [vmem:[#allocation2] sm:$0xff] }
 0x49d   : > { %v2064_v7 = vmax.f32 %v2062_v50, 0.0  ;;  %v2065_v9 = vmax.f32 %v2063_v12, 0.0 }
 0x49f   : > { %2066 = vst [vmem:[#allocation2 + $0x10] sm:$0xf] %v2064_v7  ;;  %2067 = vst [vmem:[#allocation2 + $0x18] sm:$0xf] %v2065_v9 }
 0x4f6   : > { %v2098_v35 = vpop.permute.xlu1 %2097 }
 0x4f7   : > { %v2103_v3 = vpop.permute.xlu0 %2102 }
 0x55a   : > { %v2009_v18 = vpop.f32.mrb[2].mxu1 }
 0x55b   : > { %v2072_v17 = vmul.f32 %v2070_v45, %v2009_v18  ;;  %v2011_v19 = vpop.f32.mrb[3].mxu1 }
 0x55c   : > { %v2073_v5 = vmul.f32 %v2070_v45, %v2011_v19 }
 0x55d   : > { %v2078_v20 = vadd.f32 %v2076_v63, %v2072_v17 }
 0x55e   : > { %v2079_v21 = vadd.f32 %v2076_v63, %v2073_v5 }
 0x55f   : > { %v2080_v22 = vmax.f32 %v2078_v20, 0.0 }
 0x560   : > { %v2081_v26 = vmax.f32 %v2079_v21, 0.0 }
 0x561   : > { %v2084_v4 = vrot.slane %v2080_v22, 4 }
 0x562   : > { %v2085_v15 = vrot.slane %v2081_v26, 4 }
 0x563   : > { %2088 = vst [vmem:[#allocation2 + $0x10] sm:$0xf0] %v2084_v4 }
 0x564   : > { %2089 = vst [vmem:[#allocation2 + $0x18] sm:$0xf0] %v2085_v15 }
 0x56a   : > { %v2094_v27 = vld [vmem:[#allocation2 + $0x10] sm:$0xff] }
 0x56b   : > { %v2095_v30 = vld [vmem:[#allocation2 + $0x18] sm:$0xff]  ;;  %v2371_v8 = vpack.c.bf16 %v2094_v27, %v2092_v32 }
 0x56c   : > { %v2369_v24 = vpack.c.bf16 %v2095_v30, %v2093_v28 }
 0x56e   : > { %2370 = vmatprep.subr.bf16.mxu0 %v2369_v24 }
 0x56f   : > { %2372 = vmatpush1.bf16.msra.mxu0 %v2371_v8 }
 0x572   : > { %2309 = vmatmul.mubr.msk.f32.vlgmr.msra.gmra.mrb[4].mxu0 %vm2105_vm15, %v2090_v25 }
 0x573   : > { %2182 = vmatprep.mubr.f32.mxu0 %v2444_v0 }
 0x576   : > { %2310 = vmatmul.mubr.msk.f32.gmra.mrb[6].mxu0 %vm2105_vm15, %v2091_v34 }
 0x645   : > { %v2178_v36 = vpop.f32.mrb[4].mxu0 }
 0x646   : > { %v2179_v37 = vadd.f32 %v2178_v36, %v2098_v35  ;;  %v2180_v38 = vpop.f32.mrb[5].mxu0 }
 0x647   : > { %v2181_v2 = vadd.f32 %v2180_v38, %v2098_v35 }
 0x648   : > { %2189 = vst [vmem:[%s305_s24] sm:$0xff] %v2179_v37 }
 0x649   : > { %2190 = vst [vmem:[%s305_s24 + $0x8] sm:$0xff] %v2181_v2  ;;  %v2184_v23 = vpop.f32.mrb[6].mxu0 }
 0x64a   : > { %v2185_v0 = vadd.f32 %v2184_v23, %v2103_v3  ;;  %v2186_v11 = vpop.f32.mrb[7].mxu0 }
 0x64b   : > { %v2187_v33 = vadd.f32 %v2186_v11, %v2103_v3 }
 0x64c   : > { %2191 = vst [vmem:[%s305_s24 + $0x10] sm:$0xff] %v2185_v0 }
 0x64d   : > { %2192 = vst [vmem:[%s305_s24 + $0x18] sm:$0xff] %v2187_v33 }
 0x64e PF: > { %s18_s27 = sadd.s32 1, %s2442_s27  }
 0x64f   : > { %p15_p4 = scmp.ge.s32.totalorder %s18_s27, 4  }
 0x651   :  { %17 = sbr.rel (!%p15_p4) target bundleno = 1 (0x1), region = 89 }

</bundles_post_ra>
